<compile_context>
chip_gen: v7x
topology: tpu7x:2x2x1
jax: 0.10.0
libtpu: 0.0.40
codegen_flags: <defaults>
</compile_context>

<pallas_src>
import functools

import jax
import jax.numpy as jnp
from jax import lax
from jax.experimental import pallas as pl
from jax.experimental.pallas import tpu as pltpu


# ----------------------------------------------------------------------------
# Kernel A: stride-2 3x3 conv | 2x2 max-pool | partial BN statistics.
# grid = (N // Bn,); every step writes disjoint output blocks ("parallel").
# ----------------------------------------------------------------------------
def _conv_pool_stats_kernel(x_ref, w_ref, y_ref, stats_ref):
    # x_ref:     (Bn, Hh, 2, Wh, 2*Cin) bf16 -- padded NHWC input viewed so that
    #            element [b, ih, p, iw, q*Cin + c] == x_pad[b, 2*ih+p, 2*iw+q, c]
    #            (pure reshape of the padded activation; no HBM transpose).
    # w_ref:     (9*Cin, Cc) f32 -- conv weight packed in (kh, kw, cin) order.
    # y_ref:     (Bn, 1, Cout*Ho*Wo) bf16 -- pre-BN output, NCHW-flat (bias-free;
    #            the conv bias cancels exactly in training-mode BN).
    # stats_ref: (1, 2, Cout) f32 -- per-grid-step [sum; sum-of-squares].
    bn, hh, _, wh, cin2 = x_ref.shape
    cin = cin2 // 2
    cc = w_ref.shape[1]
    ho, wo = hh - 1, wh - 1
    hw = ho * wo
    cout = cc + cin

    x = x_ref[...]                                        # (Bn, Hh, 2, Wh, 2*Cin) bf16

    # ---- stride-2 3x3 conv as ONE im2col matmul (K = 9*Cin), f32 on the MXU ----
    taps = []
    for kh in range(3):
        p, i0 = kh % 2, kh // 2
        for kw in range(3):
            q, j0 = kw % 2, kw // 2
            taps.append(x[:, i0:i0 + ho, p, j0:j0 + wo, q * cin:(q + 1) * cin])
    patches = jnp.concatenate(taps, axis=-1)              # (Bn, Ho, Wo, 9*Cin) bf16
    patches = patches.reshape(bn * hw, 9 * cin).astype(jnp.float32)
    conv = jnp.dot(patches, w_ref[...],
                   preferred_element_type=jnp.float32)    # (Bn*HW, Cc) f32

    # ---- 2x2 / stride-2 max pool (phase-indexed reads; padding never touched) ----
    p00 = x[:, 0:ho, 1, 0:wo, cin:2 * cin]
    p01 = x[:, 0:ho, 1, 1:1 + wo, 0:cin]
    p10 = x[:, 1:1 + ho, 0, 0:wo, cin:2 * cin]
    p11 = x[:, 1:1 + ho, 0, 1:1 + wo, 0:cin]
    pool = jnp.maximum(jnp.maximum(p00, p01), jnp.maximum(p10, p11))   # (Bn,Ho,Wo,Cin) bf16

    # ---- partial BN statistics (f32, from the exact pre-cast values) ----
    pool_f = pool.reshape(bn * hw, cin).astype(jnp.float32)
    s1 = jnp.concatenate([jnp.sum(conv, axis=0, keepdims=True),
                          jnp.sum(pool_f, axis=0, keepdims=True)], axis=1)       # (1, Cout)
    s2 = jnp.concatenate([jnp.sum(conv * conv, axis=0, keepdims=True),
                          jnp.sum(pool_f * pool_f, axis=0, keepdims=True)], axis=1)
    stats_ref[0] = jnp.concatenate([s1, s2], axis=0)      # (2, Cout)

    # ---- pack NCHW-flat bf16 output and store as one lane-dense block ----
    conv3 = jnp.transpose(conv.reshape(bn, hw, cc), (0, 2, 1)).astype(jnp.bfloat16)
    pool3 = jnp.transpose(pool.reshape(bn, hw, cin), (0, 2, 1))        # bf16 transpose
    y3 = jnp.concatenate([conv3, pool3], axis=1)                       # (Bn, Cout, HW) bf16
    y_ref[...] = y3.reshape(bn, 1, cout * hw)


# ----------------------------------------------------------------------------
# Kernel B: folded BatchNorm (per-channel scale/shift) + ReLU, streaming.
# ----------------------------------------------------------------------------
def _bn_relu_kernel(y_ref, scale_ref, shift_ref, o_ref):
    # y_ref: (Bn, Cout, HW) bf16;  scale/shift: (Cout, 1) f32;  o_ref: f32.
    y = y_ref[...].astype(jnp.float32)
    o_ref[...] = jnp.maximum(y * scale_ref[...] + shift_ref[...], 0.0)


# ----------------------------------------------------------------------------
# Wrapper helpers
# ----------------------------------------------------------------------------
def _vmem_limit_bytes():
    # ~3/4 of physical VMEM, capped at 96 MiB: 96 MiB on v5e/v6e (128 MiB phys),
    # 48 MiB on v7x (64 MiB phys).  Falls back to 48 MiB off-TPU / interpret.
    try:
        cap = pltpu.get_tpu_info().vmem_capacity_bytes
    except Exception:
        cap = 64 * 1024 * 1024
    return int(min(cap * 3 // 4, 96 * 1024 * 1024))


def _pick_batch_block(n, per_image_bytes, vmem_limit_bytes):
    # Budget ~1/4 of the VMEM limit for the per-step batch block: x2 for the
    # double-buffered in/out blocks is already inside per_image_bytes, and the
    # rest is headroom for compiler scratch / relayout temporaries.
    budget = vmem_limit_bytes // 4
    bn = int(max(1, min(n, budget // max(per_image_bytes, 1))))
    if n >= 2:
        # Keep at least two grid steps so the "parallel" batch axis can be
        # sharded across v7x's two TensorCores.
        bn = max(1, min(bn, n // 2))
    while n % bn:
        bn -= 1
    return bn


@functools.partial(jax.jit, static_argnames=("eps",))
def downsampler_block(x_nchw, w_hwio, b, gamma, beta, eps=1e-3):
    # NOTE: `b` (conv bias) is accepted for API parity with the PyTorch module
    # but is mathematically a no-op here: training-mode BN subtracts the batch
    # mean, which contains the same bias, so it cancels exactly.
    del b
    N, Cin, H, W = x_nchw.shape
    KH, KW, _, Cc = w_hwio.shape
    assert (KH, KW) == (3, 3)
    assert H % 2 == 0 and W % 2 == 0, "conv(stride 2, pad 1) + maxpool(2,2) concat needs even H, W"
    Cout = Cc + Cin
    Ho, Wo = H // 2, W // 2
    Hh, Wh = Ho + 1, Wo + 1            # (H+2)//2, (W+2)//2
    HW = Ho * Wo
    F = Cout * HW

    # Input prep: NCHW -> NHWC, pad by 1, cast to bf16 (one fused XLA producer).
    # The trailing reshape exposing the stride-2 row/col phases is a FREE view.
    x_pad = jnp.pad(jnp.transpose(x_nchw, (0, 2, 3, 1)).astype(jnp.bfloat16),
                    ((0, 0), (1, 1), (1, 1), (0, 0)))
    x_prep = x_pad.reshape(N, Hh, 2, Wh, 2 * Cin)

    # Weight stays f32 (tiny); activations are cast to f32 inside the kernel, so
    # the matmul is f32 x f32 (works everywhere, MXU is not the bottleneck).
    w_packed = w_hwio.astype(jnp.float32).reshape(KH * KW * Cin, Cc)   # (9*Cin, Cc)

    # Batch blocking: biggest divisor of N whose blocks fit the VMEM budget.
    vmem_limit = _vmem_limit_bytes()
    in_b = Hh * 2 * Wh * 2 * Cin * 2          # bf16 input block, per image
    out_b = F * 2 + 2 * Cout * 4              # bf16 y block + stats, per image
    scratch = HW * (9 * Cin * (2 + 4) + 3 * Cout * 4 + Cout * 2)   # im2col/transposes
    per_img = 2 * (in_b + out_b) + scratch    # 2x = double-buffered blocks
    Bn = _pick_batch_block(N, per_img, vmem_limit)
    NB = N // Bn

    cparams = pltpu.CompilerParams(
        dimension_semantics=("parallel",),
        vmem_limit_bytes=vmem_limit,
    )

    pre_bn, stats = pl.pallas_call(
        _conv_pool_stats_kernel,
        out_shape=(jax.ShapeDtypeStruct((N, 1, F), jnp.bfloat16),
                   jax.ShapeDtypeStruct((NB, 2, Cout), jnp.float32)),
        grid=(NB,),
        in_specs=[
            pl.BlockSpec((Bn, Hh, 2, Wh, 2 * Cin), lambda i: (i, 0, 0, 0, 0)),
            pl.BlockSpec((KH * KW * Cin, Cc), lambda i: (0, 0)),
        ],
        out_specs=(
            pl.BlockSpec((Bn, 1, F), lambda i: (i, 0, 0)),
            pl.BlockSpec((1, 2, Cout), lambda i: (i, 0, 0)),
        ),
        compiler_params=cparams,
    )(x_prep, w_packed)

    # Fold training-mode BatchNorm into per-channel scale / shift (tiny math).
    count = N * HW
    ssum = jnp.sum(stats, axis=0)                  # (2, Cout)
    mean = ssum[0] / count
    var = ssum[1] / count - mean * mean            # biased variance, like PyTorch BN forward
    scale = gamma.astype(jnp.float32) / jnp.sqrt(var + eps)
    shift = beta.astype(jnp.float32) - mean * scale
    scale_col = scale.reshape(Cout, 1)
    shift_col = shift.reshape(Cout, 1)

    # BN + ReLU streaming pass on the NCHW-flat view (free bitcast reshape).
    pre_bn_3d = pre_bn.reshape(N, Cout, HW)
    out = pl.pallas_call(
        _bn_relu_kernel,
        out_shape=jax.ShapeDtypeStruct((N, Cout, HW), jnp.float32),
        grid=(NB,),
        in_specs=[
            pl.BlockSpec((Bn, Cout, HW), lambda i: (i, 0, 0)),
            pl.BlockSpec((Cout, 1), lambda i: (0, 0)),
            pl.BlockSpec((Cout, 1), lambda i: (0, 0)),
        ],
        out_specs=pl.BlockSpec((Bn, Cout, HW), lambda i: (i, 0, 0)),
        compiler_params=cparams,
    )(pre_bn_3d, scale_col, shift_col)

    # (N, Cout, Ho*Wo) -> NCHW is a free reshape: no final transpose pass.
    return out.reshape(N, Cout, Ho, Wo)


# ----------------------------------------------------------------------------
# Pure-JAX reference (same semantics as the PyTorch module forward in train mode)
# ----------------------------------------------------------------------------
def ref_forward(x_nchw, w_hwio, b, gamma, beta, eps=1e-3):
    x = jnp.transpose(x_nchw, (0, 2, 3, 1)).astype(jnp.float32)
    conv = lax.conv_general_dilated(
        x, w_hwio.astype(jnp.float32), window_strides=(2, 2), padding=((1, 1), (1, 1)),
        dimension_numbers=("NHWC", "HWIO", "NHWC"),
        precision=lax.Precision.HIGHEST) + b
    pool = lax.reduce_window(x, -jnp.inf, lax.max,
                             (1, 2, 2, 1), (1, 2, 2, 1), "VALID")
    y = jnp.concatenate([conv, pool], axis=-1)
    mean = y.mean(axis=(0, 1, 2))
    var = ((y - mean) ** 2).mean(axis=(0, 1, 2))
    y = (y - mean) / jnp.sqrt(var + eps) * gamma + beta
    return jnp.transpose(jnp.maximum(y, 0.0), (0, 3, 1, 2))


if __name__ == "__main__":
    key = jax.random.PRNGKey(0)
    N, Cin, H, W = 2, 4, 16, 16          # NCHW input, matching the PyTorch module
    noutput = 16
    Cc = noutput - Cin                   # conv output channels

    k1, k2, k3, k4, k5 = jax.random.split(key, 5)
    x = jax.random.normal(k1, (N, Cin, H, W), jnp.float32)
    w = 0.1 * jax.random.normal(k2, (3, 3, Cin, Cc), jnp.float32)   # HWIO
    b = 0.1 * jax.random.normal(k3, (Cc,), jnp.float32)
    gamma = 1.0 + 0.1 * jax.random.normal(k4, (noutput,), jnp.float32)
    beta = 0.1 * jax.random.normal(k5, (noutput,), jnp.float32)

    out = downsampler_block(x, w, b, gamma, beta)
    out = jax.block_until_ready(out)
    assert out.shape == (N, noutput, H // 2, W // 2), out.shape

    # Kernel-math check: reference fed the same bf16-rounded activations
    # (isolates kernel correctness from the intentional bf16 data-path rounding;
    # tolerance covers the bf16 pre-BN intermediate as well).
    xb = x.astype(jnp.bfloat16).astype(jnp.float32)
    ref_b = ref_forward(xb, w, b, gamma, beta)
    err_kernel = float(jnp.max(jnp.abs(out - ref_b)))
    assert err_kernel < 3e-2, f"kernel math error {err_kernel}"

    # Sanity check against the full-f32 module semantics (bf16 rounding only).
    ref_f = ref_forward(x, w, b, gamma, beta)
    err_bf16 = float(jnp.max(jnp.abs(out - ref_f)))
    assert err_bf16 < 1e-1, f"bf16-path deviation too large: {err_bf16}"

    print("KERNEL_OK")
</pallas_src>

<mosaic_0001>
module attributes {stable_mosaic.version = 11 : i64} {
  func.func @_conv_pool_stats_kernel(%arg0: i32, %arg1: memref<1x9x2x9x8xbf16, #tpu.memory_space<vmem>>, %arg2: memref<36x12xf32, #tpu.memory_space<vmem>>, %arg3: memref<1x1x1024xbf16, #tpu.memory_space<vmem>>, %arg4: memref<1x2x16xf32, #tpu.memory_space<vmem>>) attributes {dimension_semantics = [#tpu.dimension_semantics<parallel>], iteration_bounds = array<i64: 2>, scalar_prefetch = 0 : i64, scratch_operands = 0 : i64, tpu.core_type = #tpu.core_type<tc>, window_params = [{transform_indices = @transform_0, window_bounds = array<i64: 1, 9, 2, 9, 8>}, {pipeline_mode = #tpu.pipeline_mode<synchronous>, transform_indices = @transform_1, window_bounds = array<i64: 36, 12>}, {transform_indices = @transform_2, window_bounds = array<i64: 1, 1, 1024>}, {transform_indices = @transform_3, window_bounds = array<i64: 1, 2, 16>}]} {
    %c0 = arith.constant 0 : index
    %c0_0 = arith.constant 0 : index
    %c0_1 = arith.constant 0 : index
    %c0_2 = arith.constant 0 : index
    %c0_3 = arith.constant 0 : index
    %0 = vector.load %arg1[%c0, %c0_0, %c0_1, %c0_2, %c0_3] : memref<1x9x2x9x8xbf16, #tpu.memory_space<vmem>>, vector<1x9x2x9x8xbf16>
    %1 = vector.extract_strided_slice %0 {offsets = [0, 0, 0, 0, 0], sizes = [1, 8, 1, 8, 4], strides = [1, 1, 1, 1, 1]} : vector<1x9x2x9x8xbf16> to vector<1x8x1x8x4xbf16>
    %2 = vector.shape_cast %1 : vector<1x8x1x8x4xbf16> to vector<1x8x8x4xbf16>
    %3 = vector.extract_strided_slice %0 {offsets = [0, 0, 0, 0, 4], sizes = [1, 8, 1, 8, 4], strides = [1, 1, 1, 1, 1]} : vector<1x9x2x9x8xbf16> to vector<1x8x1x8x4xbf16>
    %4 = vector.shape_cast %3 : vector<1x8x1x8x4xbf16> to vector<1x8x8x4xbf16>
    %5 = vector.extract_strided_slice %0 {offsets = [0, 0, 0, 1, 0], sizes = [1, 8, 1, 8, 4], strides = [1, 1, 1, 1, 1]} : vector<1x9x2x9x8xbf16> to vector<1x8x1x8x4xbf16>
    %6 = vector.shape_cast %5 : vector<1x8x1x8x4xbf16> to vector<1x8x8x4xbf16>
    %7 = vector.extract_strided_slice %0 {offsets = [0, 0, 1, 0, 0], sizes = [1, 8, 1, 8, 4], strides = [1, 1, 1, 1, 1]} : vector<1x9x2x9x8xbf16> to vector<1x8x1x8x4xbf16>
    %8 = vector.shape_cast %7 : vector<1x8x1x8x4xbf16> to vector<1x8x8x4xbf16>
    %9 = vector.extract_strided_slice %0 {offsets = [0, 0, 1, 0, 4], sizes = [1, 8, 1, 8, 4], strides = [1, 1, 1, 1, 1]} : vector<1x9x2x9x8xbf16> to vector<1x8x1x8x4xbf16>
    %10 = vector.shape_cast %9 : vector<1x8x1x8x4xbf16> to vector<1x8x8x4xbf16>
    %11 = vector.extract_strided_slice %0 {offsets = [0, 0, 1, 1, 0], sizes = [1, 8, 1, 8, 4], strides = [1, 1, 1, 1, 1]} : vector<1x9x2x9x8xbf16> to vector<1x8x1x8x4xbf16>
    %12 = vector.shape_cast %11 : vector<1x8x1x8x4xbf16> to vector<1x8x8x4xbf16>
    %13 = vector.extract_strided_slice %0 {offsets = [0, 1, 0, 0, 0], sizes = [1, 8, 1, 8, 4], strides = [1, 1, 1, 1, 1]} : vector<1x9x2x9x8xbf16> to vector<1x8x1x8x4xbf16>
    %14 = vector.shape_cast %13 : vector<1x8x1x8x4xbf16> to vector<1x8x8x4xbf16>
    %15 = vector.extract_strided_slice %0 {offsets = [0, 1, 0, 0, 4], sizes = [1, 8, 1, 8, 4], strides = [1, 1, 1, 1, 1]} : vector<1x9x2x9x8xbf16> to vector<1x8x1x8x4xbf16>
    %16 = vector.shape_cast %15 : vector<1x8x1x8x4xbf16> to vector<1x8x8x4xbf16>
    %17 = vector.extract_strided_slice %0 {offsets = [0, 1, 0, 1, 0], sizes = [1, 8, 1, 8, 4], strides = [1, 1, 1, 1, 1]} : vector<1x9x2x9x8xbf16> to vector<1x8x1x8x4xbf16>
    %18 = vector.shape_cast %17 : vector<1x8x1x8x4xbf16> to vector<1x8x8x4xbf16>
    %19 = tpu.concatenate %2, %4, %6, %8, %10, %12, %14, %16, %18 in 3 : vector<1x8x8x4xbf16>, vector<1x8x8x4xbf16>, vector<1x8x8x4xbf16>, vector<1x8x8x4xbf16>, vector<1x8x8x4xbf16>, vector<1x8x8x4xbf16>, vector<1x8x8x4xbf16>, vector<1x8x8x4xbf16>, vector<1x8x8x4xbf16> -> vector<1x8x8x36xbf16>
    %20 = vector.shape_cast %19 : vector<1x8x8x36xbf16> to vector<64x36xbf16>
    %21 = arith.extf %20 : vector<64x36xbf16> to vector<64x36xf32>
    %c0_4 = arith.constant 0 : index
    %c0_5 = arith.constant 0 : index
    %22 = vector.load %arg2[%c0_4, %c0_5] : memref<36x12xf32, #tpu.memory_space<vmem>>, vector<36x12xf32>
    %cst = arith.constant dense<0.000000e+00> : vector<64x12xf32>
    %23 = tpu.matmul %21, %22, %cst {dimension_numbers = #tpu.dot_dimension_numbers<[1], [0], [0], [1], [0, 0, 1, 1], [], []>} : vector<64x36xf32>, vector<36x12xf32>, vector<64x12xf32> -> vector<64x12xf32>
    %24 = vector.extract_strided_slice %0 {offsets = [0, 0, 1, 0, 4], sizes = [1, 8, 1, 8, 4], strides = [1, 1, 1, 1, 1]} : vector<1x9x2x9x8xbf16> to vector<1x8x1x8x4xbf16>
    %25 = vector.shape_cast %24 : vector<1x8x1x8x4xbf16> to vector<1x8x8x4xbf16>
    %26 = vector.extract_strided_slice %0 {offsets = [0, 0, 1, 1, 0], sizes = [1, 8, 1, 8, 4], strides = [1, 1, 1, 1, 1]} : vector<1x9x2x9x8xbf16> to vector<1x8x1x8x4xbf16>
    %27 = vector.shape_cast %26 : vector<1x8x1x8x4xbf16> to vector<1x8x8x4xbf16>
    %28 = vector.extract_strided_slice %0 {offsets = [0, 1, 0, 0, 4], sizes = [1, 8, 1, 8, 4], strides = [1, 1, 1, 1, 1]} : vector<1x9x2x9x8xbf16> to vector<1x8x1x8x4xbf16>
    %29 = vector.shape_cast %28 : vector<1x8x1x8x4xbf16> to vector<1x8x8x4xbf16>
    %30 = vector.extract_strided_slice %0 {offsets = [0, 1, 0, 1, 0], sizes = [1, 8, 1, 8, 4], strides = [1, 1, 1, 1, 1]} : vector<1x9x2x9x8xbf16> to vector<1x8x1x8x4xbf16>
    %31 = vector.shape_cast %30 : vector<1x8x1x8x4xbf16> to vector<1x8x8x4xbf16>
    %32 = arith.maximumf %25, %27 : vector<1x8x8x4xbf16>
    %33 = arith.maximumf %29, %31 : vector<1x8x8x4xbf16>
    %34 = arith.maximumf %32, %33 : vector<1x8x8x4xbf16>
    %35 = vector.shape_cast %34 : vector<1x8x8x4xbf16> to vector<64x4xbf16>
    %36 = arith.extf %35 : vector<64x4xbf16> to vector<64x4xf32>
    %cst_6 = arith.constant dense<0.000000e+00> : vector<12xf32>
    %37 = vector.multi_reduction <add>, %23, %cst_6 [0] : vector<64x12xf32> to vector<12xf32>
    %38 = vector.shape_cast %37 : vector<12xf32> to vector<1x12xf32>
    %cst_7 = arith.constant dense<0.000000e+00> : vector<4xf32>
    %39 = vector.multi_reduction <add>, %36, %cst_7 [0] : vector<64x4xf32> to vector<4xf32>
    %40 = vector.shape_cast %39 : vector<4xf32> to vector<1x4xf32>
    %41 = tpu.concatenate %38, %40 in 1 : vector<1x12xf32>, vector<1x4xf32> -> vector<1x16xf32>
    %42 = arith.mulf %23, %23 : vector<64x12xf32>
    %cst_8 = arith.constant dense<0.000000e+00> : vector<12xf32>
    %43 = vector.multi_reduction <add>, %42, %cst_8 [0] : vector<64x12xf32> to vector<12xf32>
    %44 = vector.shape_cast %43 : vector<12xf32> to vector<1x12xf32>
    %45 = arith.mulf %36, %36 : vector<64x4xf32>
    %cst_9 = arith.constant dense<0.000000e+00> : vector<4xf32>
    %46 = vector.multi_reduction <add>, %45, %cst_9 [0] : vector<64x4xf32> to vector<4xf32>
    %47 = vector.shape_cast %46 : vector<4xf32> to vector<1x4xf32>
    %48 = tpu.concatenate %44, %47 in 1 : vector<1x12xf32>, vector<1x4xf32> -> vector<1x16xf32>
    %49 = tpu.concatenate %41, %48 in 0 : vector<1x16xf32>, vector<1x16xf32> -> vector<2x16xf32>
    %c0_10 = arith.constant 0 : index
    %c0_11 = arith.constant 0 : index
    %c0_12 = arith.constant 0 : index
    %50 = vector.load %arg4[%c0_10, %c0_11, %c0_12] : memref<1x2x16xf32, #tpu.memory_space<vmem>>, vector<1x2x16xf32>
    %51 = vector.shape_cast %50 : vector<1x2x16xf32> to vector<2x16xf32>
    %52 = vector.shape_cast %49 : vector<2x16xf32> to vector<1x2x16xf32>
    tpu.vector_store %arg4[%c0_10, %c0_11, %c0_12], %52 {strides = array<i32>} : memref<1x2x16xf32, #tpu.memory_space<vmem>>, vector<1x2x16xf32>,
    %53 = vector.shape_cast %23 : vector<64x12xf32> to vector<1x64x12xf32>
    %54 = tpu.transpose %53, [0, 2, 1] : vector<1x64x12xf32> -> vector<1x12x64xf32>
    %55 = arith.truncf %54 : vector<1x12x64xf32> to vector<1x12x64xbf16>
    %56 = vector.shape_cast %34 : vector<1x8x8x4xbf16> to vector<1x64x4xbf16>
    %57 = tpu.transpose %56, [0, 2, 1] : vector<1x64x4xbf16> -> vector<1x4x64xbf16>
    %58 = tpu.concatenate %55, %57 in 1 : vector<1x12x64xbf16>, vector<1x4x64xbf16> -> vector<1x16x64xbf16>
    %59 = vector.shape_cast %58 : vector<1x16x64xbf16> to vector<1x1x1024xbf16>
    %c0_13 = arith.constant 0 : index
    %c0_14 = arith.constant 0 : index
    %c0_15 = arith.constant 0 : index
    %60 = vector.load %arg3[%c0_13, %c0_14, %c0_15] : memref<1x1x1024xbf16, #tpu.memory_space<vmem>>, vector<1x1x1024xbf16>
    tpu.vector_store %arg3[%c0_13, %c0_14, %c0_15], %59 {strides = array<i32>} : memref<1x1x1024xbf16, #tpu.memory_space<vmem>>, vector<1x1x1024xbf16>,
    return
  }
  func.func @transform_0(%arg0: i32) -> (i32, i32, i32, i32, i32) {
    %c0_i32 = arith.constant 0 : i32
    %c0_i32_0 = arith.constant 0 : i32
    %c0_i32_1 = arith.constant 0 : i32
    %c0_i32_2 = arith.constant 0 : i32
    %c0_i32_3 = arith.constant 0 : i32
    return %arg0, %c0_i32, %c0_i32_0, %c0_i32_1, %c0_i32_2 : i32, i32, i32, i32, i32
  }
  func.func @transform_1(%arg0: i32) -> (i32, i32) {
    %c0_i32 = arith.constant 0 : i32
    %c0_i32_0 = arith.constant 0 : i32
    %c0_i32_1 = arith.constant 0 : i32
    return %c0_i32, %c0_i32_0 : i32, i32
  }
  func.func @transform_2(%arg0: i32) -> (i32, i32, i32) {
    %c0_i32 = arith.constant 0 : i32
    %c0_i32_0 = arith.constant 0 : i32
    %c0_i32_1 = arith.constant 0 : i32
    return %arg0, %c0_i32, %c0_i32_0 : i32, i32, i32
  }
  func.func @transform_3(%arg0: i32) -> (i32, i32, i32) {
    %c0_i32 = arith.constant 0 : i32
    %c0_i32_0 = arith.constant 0 : i32
    %c0_i32_1 = arith.constant 0 : i32
    return %arg0, %c0_i32, %c0_i32_0 : i32, i32, i32
  }
}

module attributes {stable_mosaic.version = 11 : i64} {
  func.func @_bn_relu_kernel(%arg0: i32, %arg1: memref<1x16x64xbf16, #tpu.memory_space<vmem>>, %arg2: memref<16x1xf32, #tpu.memory_space<vmem>>, %arg3: memref<16x1xf32, #tpu.memory_space<vmem>>, %arg4: memref<1x16x64xf32, #tpu.memory_space<vmem>>) attributes {dimension_semantics = [#tpu.dimension_semantics<parallel>], iteration_bounds = array<i64: 2>, scalar_prefetch = 0 : i64, scratch_operands = 0 : i64, tpu.core_type = #tpu.core_type<tc>, window_params = [{transform_indices = @transform_0, window_bounds = array<i64: 1, 16, 64>}, {pipeline_mode = #tpu.pipeline_mode<synchronous>, transform_indices = @transform_1, window_bounds = array<i64: 16, 1>}, {pipeline_mode = #tpu.pipeline_mode<synchronous>, transform_indices = @transform_2, window_bounds = array<i64: 16, 1>}, {transform_indices = @transform_3, window_bounds = array<i64: 1, 16, 64>}]} {
    %c0 = arith.constant 0 : index
    %c0_0 = arith.constant 0 : index
    %c0_1 = arith.constant 0 : index
    %0 = vector.load %arg1[%c0, %c0_0, %c0_1] : memref<1x16x64xbf16, #tpu.memory_space<vmem>>, vector<1x16x64xbf16>
    %1 = arith.extf %0 : vector<1x16x64xbf16> to vector<1x16x64xf32>
    %c0_2 = arith.constant 0 : index
    %c0_3 = arith.constant 0 : index
    %2 = vector.load %arg2[%c0_2, %c0_3] : memref<16x1xf32, #tpu.memory_space<vmem>>, vector<16x1xf32>
    %3 = vector.shape_cast %2 : vector<16x1xf32> to vector<1x16x1xf32>
    %4 = vector.broadcast %3 : vector<1x16x1xf32> to vector<1x16x64xf32>
    %5 = arith.mulf %1, %4 : vector<1x16x64xf32>
    %c0_4 = arith.constant 0 : index
    %c0_5 = arith.constant 0 : index
    %6 = vector.load %arg3[%c0_4, %c0_5] : memref<16x1xf32, #tpu.memory_space<vmem>>, vector<16x1xf32>
    %7 = vector.shape_cast %6 : vector<16x1xf32> to vector<1x16x1xf32>
    %8 = vector.broadcast %7 : vector<1x16x1xf32> to vector<1x16x64xf32>
    %9 = arith.addf %5, %8 : vector<1x16x64xf32>
    %cst = arith.constant 0.000000e+00 : f32
    %10 = vector.broadcast %cst : f32 to vector<1x16x64xf32>
    %11 = arith.maximumf %9, %10 : vector<1x16x64xf32>
    %c0_6 = arith.constant 0 : index
    %c0_7 = arith.constant 0 : index
    %c0_8 = arith.constant 0 : index
    %12 = vector.load %arg4[%c0_6, %c0_7, %c0_8] : memref<1x16x64xf32, #tpu.memory_space<vmem>>, vector<1x16x64xf32>
    tpu.vector_store %arg4[%c0_6, %c0_7, %c0_8], %11 {strides = array<i32>} : memref<1x16x64xf32, #tpu.memory_space<vmem>>, vector<1x16x64xf32>,
    return
  }
  func.func @transform_0(%arg0: i32) -> (i32, i32, i32) {
    %c0_i32 = arith.constant 0 : i32
    %c0_i32_0 = arith.constant 0 : i32
    %c0_i32_1 = arith.constant 0 : i32
    return %arg0, %c0_i32, %c0_i32_0 : i32, i32, i32
  }
  func.func @transform_1(%arg0: i32) -> (i32, i32) {
    %c0_i32 = arith.constant 0 : i32
    %c0_i32_0 = arith.constant 0 : i32
    %c0_i32_1 = arith.constant 0 : i32
    return %c0_i32, %c0_i32_0 : i32, i32
  }
  func.func @transform_2(%arg0: i32) -> (i32, i32) {
    %c0_i32 = arith.constant 0 : i32
    %c0_i32_0 = arith.constant 0 : i32
    %c0_i32_1 = arith.constant 0 : i32
    return %c0_i32, %c0_i32_0 : i32, i32
  }
  func.func @transform_3(%arg0: i32) -> (i32, i32, i32) {
    %c0_i32 = arith.constant 0 : i32
    %c0_i32_0 = arith.constant 0 : i32
    %c0_i32_1 = arith.constant 0 : i32
    return %arg0, %c0_i32, %c0_i32_0 : i32, i32, i32
  }
}

</mosaic_0001>

<bundles_post_ra>
// kernel: downsampler_block.3
= control target key start
LH: loop header
LB: loop body
LE: loop exit
PB: predicated region body
PF: predicated region fallthrough
CT: control target
= control target key end

     0   :  { %s320_s12 = smov 0   ;;  %s349_s0 = inlined_call_operand.vmem [shape: bf16[2,16,64], index: 0, kind: input, shape index: {}]   ;;  %s350_s1 = inlined_call_operand.vmem [shape: f32[16,1], index: 1, kind: input, shape index: {}]   ;;  %s351_s2 = inlined_call_operand.vmem [shape: f32[16,1], index: 2, kind: input, shape index: {}]   ;;  %s352_s3 = inlined_call_operand.vmem [shape: f32[2,16,64], index: 3, kind: output, shape index: {}]  }
   0x1 LB: > { %s263_s13 = sadd.s32 4294967295, %s297_s12   ;;  %p267_p0 = scmp.ge.s32.totalorder %s297_s12, 1  ;;  %s297_s12 = sphi %s320_s12, %s13_s12  }
   0x2   : > { %p137_p1 = scmp.lt.s32.totalorder %s297_s12, 3 }
   0x4   : > { %p138_p2 = pnand %p267_p0, %p137_p1 }
   0x5   : > { %v189_v0 = vld [vmem:[%s351_s2] sm:$0xff] (!%p138_p2)  ;;  %v299_v2 = vmov (!%p138_p2), 0   ;;  %v190_v3 = vld [vmem:[%s351_s2 + $0x8] sm:$0xff] (!%p138_p2)  ;;  %p161_p3 = scmp.lt.s32.totalorder (!%p138_p2), %s263_s13, 1  ;;  %vm205_vm0 = vcmask (!%p138_p2), 523264  }
   0x6   : > { %141 = sbr.rel (%p138_p2) target bundleno = 146 (0x92), region = 32  ;;  %v175_v1 = vld [vmem:[%s350_s1] sm:$0xff] (!%p138_p2)  ;;  %290 = vset.pattern.permute.xlu1 (!%p138_p2), %v299_v2  ;;  %289 = vset.pattern.permute.xlu0 (!%p138_p2), %v299_v2  ;;  %v176_v4 = vld [vmem:[%s350_s1 + $0x8] sm:$0xff] (!%p138_p2) }
   0x7   : > { %193 = vperm.xlu1 (!%p138_p2), %290, %v189_v0   ;;  %179 = vperm.xlu0 (!%p138_p2), %289, %v175_v1  }
   0xb   : > { %198 = vperm.xlu1 (!%p138_p2), %290, %v190_v3   ;;  %184 = vperm.xlu0 (!%p138_p2), %289, %v176_v4  }
   0xd   : > { %s354_s13 = smov (!%p161_p3, %s263_s13), 1 }
   0xe   : > { %s274_s22 = sshll.u32 %s354_s13, 3  ;;  %s275_s26 = sshll.u32 %s354_s13, 4 }
   0xf   : > { %s165_s25 = scalar_lea.vmem %s349_s0, %s274_s22  ;;  %s170_s29 = scalar_lea.vmem %s352_s3, %s275_s26 }
  0x10   : > { %v277_v5 = vld [vmem:[%s165_s25] sm:$0xff]  }
  0x11   : > { %v278_v6 = vunpack.c.l.bf16 %v277_v5  ;;  %v279_v10 = vunpack.c.h.bf16 %v277_v5 }
  0x86   : > { %v194_v7 = vpop.permute.xlu1 %193  ;;  %v180_v8 = vpop.permute.xlu0 %179 }
  0x87   : > { %v187_v9 = vmul.f32 %v278_v6, %v180_v8 }
  0x89   : > { %v201_v11 = vadd.f32 %v194_v7, %v187_v9 }
  0x8a   : > { %v185_v12 = vpop.permute.xlu0 %184  ;;  %v199_v15 = vpop.permute.xlu1 %198 }
  0x8b   : > { %v203_v13 = vmax.f32 %v201_v11, 0.0  ;;  %v188_v14 = vmul.f32 %v279_v10, %v185_v12 }
  0x8d   : > { %206 = vst.msk [vmem:[%s170_s29] sm:$0xff] %vm205_vm0, %v203_v13  ;;  %v202_v16 = vadd.f32 %v199_v15, %v188_v14 }
  0x8f   : > { %v204_v17 = vmax.f32 %v202_v16, 0.0 }
  0x91   : > { %207 = vst.msk [vmem:[%s170_s29 + $0x8] sm:$0xff] %vm205_vm0, %v204_v17 }
  0x92 PF: > { %s13_s12 = sadd.s32 1, %s297_s12  }
  0x93   : > { %p10_p4 = scmp.ge.s32.totalorder %s13_s12, 4  }
  0x95   :  { %12 = sbr.rel (!%p10_p4) target bundleno = 1 (0x1), region = 62 }

// kernel: downsampler_block.2
= control target key start
LH: loop header
LB: loop body
LE: loop exit
PB: predicated region body
PF: predicated region fallthrough
CT: control target
= control target key end

     0   :  { %s1819_s12 = smov 0   ;;  %s2437_s0 = inlined_call_operand.vmem [shape: bf16[2,9,2,9,8], index: 0, kind: input, shape index: {}]   ;;  %s2438_s1 = inlined_call_operand.vmem [shape: f32[36,12], index: 1, kind: input, shape index: {}]   ;;  %s2439_s2 = inlined_call_operand.vmem [shape: bf16[2,1,1024], index: 2, kind: output, shape index: {0}]   ;;  %s2440_s3 = inlined_call_operand.vmem [shape: f32[2,2,16], index: 3, kind: output, shape index: {1}]  }
   0x1 LB: > { %s1619_s13 = sadd.s32 4294967295, %s1785_s12   ;;  %p1623_p0 = scmp.ge.s32.totalorder %s1785_s12, 1  ;;  %s1785_s12 = sphi %s1819_s12, %s14_s12  }
   0x2   : > { %p140_p1 = scmp.lt.s32.totalorder %s1785_s12, 3 }
   0x4   : > { %p141_p2 = pnand %p1623_p0, %p140_p1 }
   0x5   : > { %p167_p3 = scmp.lt.s32.totalorder (!%p141_p2), %s1619_s13, 1  ;;  %s1787_s18 = smov (!%p141_p2), 12   ;;  %v642_v62 = vld [vmem:[%s2438_s1] sm:$0xff] (!%p141_p2)  ;;  %v643_v63 = vld [vmem:[%s2438_s1 + $0x8] sm:$0xff] (!%p141_p2)  ;;  %vm672_vm0 = vcmask (!%p141_p2), 1043456   ;;  %vm523_vm4 = vcmask (!%p141_p2), 64512  }
   0x6   : > { %144 = sbr.rel (%p141_p2) target bundleno = 707 (0x2c3), region = 28  ;;  %s1788_s19 = smov (!%p141_p2), 8   ;;  %vm781_vm1 = vsmask.f32 (!%p141_p2), 3328  ;;  %vm782_vm2 = vsmask.f32 (!%p141_p2), 7440 }
   0x7   : > { %s1789_s20 = smov (!%p141_p2), 24   ;;  %s1790_s21 = smov (!%p141_p2), 20   ;;  %vm2104_vm3 = vmor (!%p141_p2), %vm781_vm1, %vm782_vm2  ;;  %vm540_vm5 = vcmask (!%p141_p2), 97280   ;;  %vm557_vm6 = vcmask (!%p141_p2), 130048   ;;  %vm566_vm7 = vcmask (!%p141_p2), 162816   ;;  %vm583_vm8 = vcmask (!%p141_p2), 195584  }
   0x8   : > { %s1791_s5 = smov (!%p141_p2), 32   ;;  %s1792_s6 = smov (!%p141_p2), 4   ;;  %vm600_vm9 = vcmask (!%p141_p2), 228352   ;;  %vm609_vm10 = vcmask (!%p141_p2), 261120   ;;  %vm647_vm11 = vcmask (!%p141_p2), 293888   ;;  %vm1102_vm12 = vcmask (!%p141_p2), 64544  }
   0x9   : > { %s1793_s7 = smov (!%p141_p2), 124   ;;  %vm1282_vm13 = vcmask (!%p141_p2), 1045504   ;;  %s1797_s8 = smov (!%p141_p2), 64   ;;  %vm1195_vm14 = vcmask (!%p141_p2), 1040384   ;;  %vm1503_vm15 = vsmask.f32 (!%p141_p2), 256 }
   0xa   : > { %vm1506_vm2 = vsmask.f32 (!%p141_p2), 1280 }
   0xd   : > { %s2458_s13 = smov (!%p167_p3, %s1619_s13), 1 }
   0xe   : > { %s1724_s14 = smul.u32 144, %s2458_s13  ;;  %s1625_s9 = sshll.u32 %s2458_s13, 3 }
   0xf   : > { %s1626_s10 = sshll.u32 %s2458_s13, 1  ;;  %s175_s15 = scalar_lea.vmem %s2439_s2, %s1625_s9 }
  0x10   : > { %s1833_s17 = scalar_lea.vmem %s2437_s0, %s1724_s14 }
  0x11   : > { %v1836_v0 = vld [vmem:[%s1833_s17 + $0x8] sm:$0xf]  ;;  %v1839_v1 = vld [vmem:[%s1833_s17 + $0x18] sm:$0xf]  ;;  %v1842_v2 = vld [vmem:[%s1833_s17] sm:$0xf] }
  0x12   : > { %v1635_v3 = vcombine.low %v1836_v0, %v1836_v0  ;;  %v182_v4 = vld [vmem:[%s1833_s17 + $0x4] sm:$0x1]  ;;  %v1848_v5 = vld [vmem:[%s1833_s17 + $0x10] sm:$0xf]  ;;  %v1851_v6 = vld [vmem:[%s1833_s17 + $0x14] sm:$0x1]  ;;  %v1636_v11 = vcombine.low %v1839_v1, %v1839_v1 }
  0x13   : > { %v1627_v7 = vcombine.low %v1842_v2, %v182_v4  ;;  %v1628_v8 = vcombine.low %v1848_v5, %v1851_v6  ;;  %v1857_v9 = vld [vmem:[%s1833_s17 + $0xc] sm:$0x1]  ;;  %v1860_v10 = vld [vmem:[%s1833_s17 + $0x20] sm:$0xf]  ;;  %v1868_v13 = vld [vmem:[%s1833_s17 + $0x24] sm:$0x1]  ;;  %v1651_v24 = vcombine.low %v1848_v5, %v1848_v5 }
  0x14   : > { %351 = vrot.lane.b32.xlu1 %v1635_v3, %s1787_s18  ;;  %v1643_v12 = vcombine.low %v1836_v0, %v1857_v9  ;;  %v1871_v14 = vld [vmem:[%s1833_s17 + $0x1c] sm:$0x1]  ;;  %v1629_v19 = vcombine.low %v1860_v10, %v1868_v13  ;;  %v1881_v26 = vld [vmem:[%s1833_s17 + $0x30] sm:$0xf]  ;;  %v1884_v27 = vld [vmem:[%s1833_s17 + $0x34] sm:$0x1]  ;;  %v1652_v3 = vcombine.low %v1860_v10, %v1860_v10 }
  0x15   : > { %v256_v15 = vshrl.u32 %v1627_v7, 16  ;;  %v258_v16 = vshll.u32 %v1627_v7, 16  ;;  %v265_v17 = vshll.u32 %v1628_v8, 16  ;;  %v263_v18 = vshrl.u32 %v1628_v8, 16  ;;  %v1887_v29 = vld [vmem:[%s1833_s17 + $0x28] sm:$0xf] }
  0x16   : > { %v394_v22 = vshll.u32 %v1643_v12, 16  ;;  %v1644_v23 = vcombine.low %v1839_v1, %v1871_v14  ;;  %v272_v25 = vshll.u32 %v1629_v19, 16  ;;  %v1890_v30 = vld [vmem:[%s1833_s17 + $0x2c] sm:$0x1]  ;;  %v392_v31 = vshrl.u32 %v1643_v12, 16  ;;  %v644_v7 = vld [vmem:[%s2438_s1 + $0x10] sm:$0xff] }
  0x17   : > { %v260_v20 = vrot.slane %v258_v16, 1  ;;  %v267_v21 = vrot.slane %v265_v17, 1  ;;  %v1630_v35 = vcombine.low %v1881_v26, %v1884_v27  ;;  %v1637_v36 = vcombine.low %v1887_v29, %v1887_v29  ;;  %v1903_v40 = vld [vmem:[%s1833_s17 + $0x40] sm:$0xf]  ;;  %v1906_v41 = vld [vmem:[%s1833_s17 + $0x44] sm:$0x1] }
  0x18   : > { %353 = vrot.lane.b32.xlu1 %v1636_v11, %s1787_s18  ;;  %v396_v33 = vrot.slane %v394_v22, 1  ;;  %v401_v34 = vshll.u32 %v1644_v23, 16  ;;  %v270_v37 = vshrl.u32 %v1629_v19, 16  ;;  %v274_v38 = vrot.slane %v272_v25, 1  ;;  %v1916_v49 = vld [vmem:[%s1833_s17 + $0x38] sm:$0xf] }
  0x19   : > { %v261_v28 = vor.u32 %v260_v20, %v256_v15  ;;  %v1893_v32 = vor.u32 %v267_v21, %v263_v18  ;;  %v1645_v39 = vcombine.low %v1887_v29, %v1890_v30  ;;  %v399_v43 = vshrl.u32 %v1644_v23, 16  ;;  %v1928_v61 = vld [vmem:[%s1833_s17 + $0x3c] sm:$0x1]  ;;  %v1952_v12 = vld [vmem:[%s1833_s17 + $0x50] sm:$0xf] }
  0x1a   : > { %v397_v42 = vor.u32 %v396_v33, %v392_v31  ;;  %v403_v44 = vrot.slane %v401_v34, 1  ;;  %v279_v45 = vshll.u32 %v1630_v35, 16  ;;  %v1911_v46 = vor.u32 %v274_v38, %v270_v37  ;;  %v645_v8 = vld [vmem:[%s2438_s1 + $0x18] sm:$0xff]  ;;  %v1955_v15 = vld [vmem:[%s1833_s17 + $0x54] sm:$0x1] }
  0x1b   : > { %311 = vrot.lane.b32.xlu0 %v261_v28, %s1788_s19  ;;  %v408_v47 = vshll.u32 %v1645_v39, 16  ;;  %v1631_v48 = vcombine.low %v1903_v40, %v1906_v41  ;;  %v277_v51 = vshrl.u32 %v1630_v35, 16  ;;  %v1638_v53 = vcombine.low %v1916_v49, %v1916_v49  ;;  %v1958_v17 = vld [vmem:[%s1833_s17 + $0x4c] sm:$0x1]  ;;  %v1962_v19 = vld [vmem:[%s1833_s17 + $0x48] sm:$0xf] }
  0x1c   : > { %473 = vrot.lane.b32.xlu1 %v1651_v24, %s1789_s20  ;;  %v404_v50 = vor.u32 %v403_v44, %v399_v43  ;;  %v281_v52 = vrot.slane %v279_v45, 1  ;;  %v406_v54 = vshrl.u32 %v1645_v39, 16  ;;  %v1646_v4 = vcombine.low %v1916_v49, %v1928_v61  ;;  %v1973_v24 = vld [vmem:[%s1833_s17 + $0x60] sm:$0xf]  ;;  %v1976_v25 = vld [vmem:[%s1833_s17 + $0x64] sm:$0x1] }
  0x1d   : > { %v410_v55 = vrot.slane %v408_v47, 1  ;;  %v286_v56 = vshll.u32 %v1631_v48, 16  ;;  %v284_v59 = vshrl.u32 %v1631_v48, 16  ;;  %v1710_v16 = vpack.c.bf16 %v643_v63, %v642_v62  ;;  %v646_v28 = vld [vmem:[%s2438_s1 + $0x20] sm:$0xf] }
  0x1e   : > { %v1924_v57 = vor.u32 %v281_v52, %v277_v51  ;;  %v1714_v18 = vpack.c.bf16 %v645_v8, %v644_v7  ;;  %v415_v20 = vshll.u32 %v1646_v4, 16  ;;  %v1632_v21 = vcombine.low %v1952_v12, %v1955_v15  ;;  %v1990_v38 = vld [vmem:[%s1833_s17 + $0x58] sm:$0xf]  ;;  %v2005_v52 = vld [vmem:[%s1833_s17 + $0x5c] sm:$0x1] }
  0x1f   : > { %313 = vrot.lane.b32.xlu0 %v1893_v32, %s1788_s19  ;;  %v411_v58 = vor.u32 %v410_v55, %v406_v54  ;;  %v288_v60 = vrot.slane %v286_v56, 1  ;;  %1711 = vmatprep.subr.bf16.mxu0 %v1710_v16  ;;  %v1653_v22 = vcombine.low %v1881_v26, %v1881_v26  ;;  %v1647_v23 = vcombine.low %v1962_v19, %v1958_v17  ;;  %v2017_v56 = vld [vmem:[%s1833_s17 + $0x70] sm:$0xf]  ;;  %v2038_v7 = vld [vmem:[%s1833_s17 + $0x7c] sm:$0x1] }
  0x20   : > { %355 = vrot.lane.b32.xlu1 %v1637_v36, %s1787_s18  ;;  %1718 = vmatprep.subr.bf16.mxu1 %v1710_v16  ;;  %v413_v31 = vshrl.u32 %v1646_v4, 16  ;;  %v417_v33 = vrot.slane %v415_v20, 1  ;;  %v293_v34 = vshll.u32 %v1632_v21, 16  ;;  %v1639_v35 = vcombine.low %v1962_v19, %v1962_v19 }
  0x21   : > { %v1949_v11 = vor.u32 %v288_v60, %v284_v59  ;;  %1713 = vmatpush3.bf16.msra.mxu0 %v1710_v16  ;;  %1721 = vmatpush3.bf16.msra.mxu1 %v1710_v16  ;;  %v422_v36 = vshll.u32 %v1647_v23, 16  ;;  %v1633_v37 = vcombine.low %v1973_v24, %v1976_v25  ;;  %v291_v39 = vshrl.u32 %v1632_v21, 16  ;;  %v2023_v59 = vld [vmem:[%s1833_s17 + $0x6c] sm:$0x1]  ;;  %v2027_v60 = vld [vmem:[%s1833_s17 + $0x68] sm:$0xf] }
  0x22   : > { %1715 = vmatprep.subr.bf16.mxu0 %v1714_v18  ;;  %1719 = vmatprep.subr.bf16.mxu1 %v1714_v18  ;;  %v1640_v43 = vcombine.low %v1990_v38, %v1990_v38  ;;  %v420_v44 = vshrl.u32 %v1647_v23, 16  ;;  %v1648_v54 = vcombine.low %v1990_v38, %v2005_v52  ;;  %v1649_v4 = vcombine.low %v2027_v60, %v2023_v59 }
  0x23   : > { %447 = vrot.lane.b32.xlu0 %v397_v42, %s1790_s21  ;;  %v295_v42 = vrot.slane %v293_v34, 1  ;;  %v424_v45 = vrot.slane %v422_v36, 1  ;;  %v300_v47 = vshll.u32 %v1633_v37, 16  ;;  %v1641_v21 = vcombine.low %v2027_v60, %v2027_v60 }
  0x24   : > { %315 = vrot.lane.b32.xlu1 %v1911_v46, %s1788_s19  ;;  %v429_v62 = vshll.u32 %v1648_v54, 16  ;;  %v427_v8 = vshrl.u32 %v1648_v54, 16 }
  0x25   : > { %1717 = vmatpush3.bf16.msra.mxu0 %v1714_v18  ;;  %1722 = vmatpush3.bf16.msra.mxu1 %v1714_v18  ;;  %v425_v48 = vor.u32 %v424_v45, %v420_v44  ;;  %v302_v51 = vrot.slane %v300_v47, 1  ;;  %v2043_v18 = vld [vmem:[%s1833_s17 + $0x78] sm:$0xf]  ;;  %v799_v45 = vshrl.u32 %v1839_v1, 16  ;;  %v802_v47 = vshll.u32 %v1839_v1, 16 }
  0x26   : > { %1696 = vmatprep.subr.msk.mxu0 %vm672_vm0, %v646_v28  ;;  %1720 = vmatprep.subr.msk.mxu1 %vm672_vm0, %v646_v28  ;;  %v431_v16 = vrot.slane %v429_v62, 1  ;;  %v1650_v23 = vcombine.low %v2043_v18, %v2038_v7  ;;  %v1642_v34 = vcombine.low %v2043_v18, %v2043_v18 }
  0x27   : > { %449 = vrot.lane.b32.xlu0 %v404_v50, %s1790_s21  ;;  %v298_v50 = vshrl.u32 %v1633_v37, 16  ;;  %v801_v62 = vrot.slane %v799_v45, 4  ;;  %v967_v45 = vshrl.u32 %v1903_v40, 16 }
  0x28   : > { %357 = vrot.lane.b32.xlu1 %v1638_v53, %s1787_s18  ;;  %v1654_v53 = vcombine.low %v1903_v40, %v1903_v40  ;;  %v443_v37 = vshll.u32 %v1650_v23, 16 }
  0x29   : > { %1697 = vmatpush3.msk.msra.mxu0 %vm672_vm0, %v646_v28  ;;  %1723 = vmatpush3.msk.msra.mxu1 %vm672_vm0, %v646_v28  ;;  %v2014_v55 = vor.u32 %v302_v51, %v298_v50  ;;  %v432_v28 = vor.u32 %v431_v16, %v427_v8  ;;  %v788_v50 = vshll.u32 %v1836_v0, 16  ;;  %v1656_v51 = vcombine.low %v1973_v24, %v1973_v24 }
  0x2a   : > { %v445_v44 = vrot.slane %v443_v37, 1  ;;  %v830_v37 = vshll.u32 %v1916_v49, 16  ;;  %vm1505_vm0 = vcmask 1041409  }
  0x2b   : > { %317 = vrot.lane.b32.xlu0 %v1924_v57, %s1788_s19  ;;  %v790_v16 = vrot.slane %v788_v50, 5  ;;  %v937_v50 = vshll.u32 %v1851_v6, 16  ;;  %v969_v6 = vrot.slane %v967_v45, 4  ;;  %v976_v45 = vshll.u32 %v1906_v41, 16 }
  0x2c   : > { %451 = vrot.lane.b32.xlu1 %v411_v58, %s1790_s21  ;;  %v2020_v58 = vld [vmem:[%s1833_s17 + $0x74] sm:$0x1]  ;;  %v841_v41 = vshrl.u32 %v1962_v19, 16 }
  0x2d   : > { %v1634_v63 = vcombine.low %v2017_v56, %v2020_v58 }
  0x2f   : > { %475 = vrot.lane.b32.xlu0 %v1652_v3, %s1789_s20  ;;  %v1655_v3 = vcombine.low %v1952_v12, %v1952_v12  ;;  %v307_v20 = vshll.u32 %v1634_v63, 16 }
  0x30   : > { %319 = vrot.lane.b32.xlu1 %v1949_v11, %s1788_s19 }
  0x33   : > { %499 = vrot.lane.b32.xlu0 %v1893_v32, %s1791_s5  ;;  %v418_v32 = vor.u32 %v417_v33, %v413_v31  ;;  %v309_v31 = vrot.slane %v307_v20, 1  ;;  %v2053_v33 = vld [vmem:[%s1833_s17 + $0x80] sm:$0xf] }
  0x34   : > { %477 = vrot.lane.b32.xlu1 %v1653_v22, %s1789_s20  ;;  %v436_v22 = vshll.u32 %v1649_v4, 16  ;;  %v1658_v20 = vcombine.low %v2053_v33, %v2053_v33 }
  0x36   : > { %v438_v36 = vrot.slane %v436_v22, 1  ;;  %v931_v22 = vshll.u32 %v1848_v5, 16 }
  0x37   : > { %501 = vrot.lane.b32.xlu0 %v1911_v46, %s1791_s5  ;;  %v2001_v46 = vor.u32 %v295_v42, %v291_v39 }
  0x38   : > { %359 = vrot.lane.b32.xlu1 %v1639_v35, %s1787_s18  ;;  %v434_v35 = vshrl.u32 %v1649_v4, 16  ;;  %v944_v4 = vshll.u32 %v1860_v10, 16 }
  0x3b   : > { %453 = vrot.lane.b32.xlu0 %v418_v32, %s1790_s21  ;;  %v2059_v32 = vld [vmem:[%s1833_s17 + $0x84] sm:$0x1] }
  0x3c   : > { %361 = vrot.lane.b32.xlu1 %v1640_v43, %s1787_s18  ;;  %v1659_v42 = vcombine.low %v2053_v33, %v2059_v32  ;;  %v439_v43 = vor.u32 %v438_v36, %v434_v35  ;;  %v946_v35 = vrot.slane %v944_v4, 5  ;;  %v827_v36 = vshrl.u32 %v1916_v49, 16 }
  0x3d   : > { %v816_v4 = vshll.u32 %v1887_v29, 16 }
  0x3e   : > { %v495_v54 = vshll.u32 %v1659_v42, 16 }
  0x3f   : > { %321 = vrot.lane.b32.xlu0 %v2001_v46, %s1788_s19 }
  0x40   : > { %455 = vrot.lane.b32.xlu1 %v425_v48, %s1790_s21  ;;  %v785_v48 = vshrl.u32 %v1836_v0, 16 }
  0x42   : > { %v787_v8 = vrot.slane %v785_v48, 4 }
  0x43   : > { %479 = vrot.lane.b32.xlu0 %v1654_v53, %s1789_s20 }
  0x44   : > { %323 = vrot.lane.b32.xlu1 %v2014_v55, %s1788_s19 }
  0x47   : > { %503 = vrot.lane.b32.xlu0 %v1924_v57, %s1791_s5  ;;  %v305_v57 = vshrl.u32 %v1634_v63, 16  ;;  %v804_v63 = vrot.slane %v802_v47, 5 }
  0x48   : > { %481 = vrot.lane.b32.xlu1 %v1655_v3, %s1789_s20  ;;  %v941_v3 = vshrl.u32 %v1860_v10, 16 }
  0x49   : > { %v2062_v39 = vor.u32 %v309_v31, %v305_v57  ;;  %v805_v57 = vor.u32 %v804_v63, %v801_v62  ;;  %v808_v31 = vshll.u32 %v1871_v14, 16  ;;  %v970_v14 = vshll.u32 %v1903_v40, 16 }
  0x4a   : > { %v832_v62 = vrot.slane %v830_v37, 5  ;;  %v954_v37 = vshrl.u32 %v1881_v26, 16 }
  0x4b   : > { %505 = vrot.lane.b32.xlu0 %v1949_v11, %s1791_s5  ;;  %v441_v11 = vshrl.u32 %v1650_v23, 16  ;;  %v493_v23 = vshrl.u32 %v1659_v42, 16  ;;  %v933_v42 = vrot.slane %v931_v22, 5  ;;  %v810_v48 = vrot.slane %v808_v31, 5 }
  0x4c   : > { %363 = vrot.lane.b32.xlu1 %v1641_v21, %s1787_s18  ;;  %v928_v21 = vshrl.u32 %v1848_v5, 16 }
  0x4d   : > { %v446_v53 = vor.u32 %v445_v44, %v441_v11  ;;  %v791_v11 = vor.u32 %v790_v16, %v787_v8 }
  0x4e   : > { %v930_v44 = vrot.slane %v928_v21, 4  ;;  %v2108_v21 = vrot.slane %v937_v50, 5 }
  0x4f   : > { %457 = vrot.lane.b32.xlu0 %v432_v28, %s1790_s21  ;;  %v497_v28 = vrot.slane %v495_v54, 1  ;;  %v792_v8 = vrot.slane %v791_v11, 4  ;;  %v957_v11 = vshll.u32 %v1881_v26, 16 }
  0x50   : > { %365 = vrot.lane.b32.xlu1 %v1642_v34, %s1787_s18  ;;  %v943_v34 = vrot.slane %v941_v3, 4  ;;  %v813_v3 = vshrl.u32 %v1887_v29, 16  ;;  %v934_v16 = vor.u32 %v933_v42, %v930_v44  ;;  %s179_s18 = scalar_lea.vmem %s2440_s3, %s1626_s10 }
  0x51   : > { %v498_v47 = vor.u32 %v497_v28, %v493_v23  ;;  %v855_v23 = vshrl.u32 %v1990_v38, 16  ;;  %v858_v28 = vshll.u32 %v1990_v38, 16 }
  0x52   : > { %v947_v54 = vor.u32 %v946_v35, %v943_v34  ;;  %v836_v34 = vshll.u32 %v1928_v61, 16  ;;  %v815_v35 = vrot.slane %v813_v3, 4  ;;  %v935_v44 = vrot.slane %v934_v16, 4 }
  0x53   : > { %325 = vrot.lane.b32.xlu0 %v2062_v39, %s1788_s19  ;;  %v860_v61 = vrot.slane %v858_v28, 5  ;;  %v978_v3 = vrot.slane %v976_v45, 5  ;;  %v886_v28 = vshll.u32 %v2043_v18, 16 }
  0x54   : > { %459 = vrot.lane.b32.xlu1 %v439_v43, %s1790_s21  ;;  %v794_v43 = vshll.u32 %v1857_v9, 16  ;;  %v829_v9 = vrot.slane %v827_v36, 4  ;;  %v818_v36 = vrot.slane %v816_v4, 5  ;;  %v844_v4 = vshll.u32 %v1962_v19, 16 }
  0x56   : > { %v796_v63 = vrot.slane %v794_v43, 5  ;;  %v833_v31 = vor.u32 %v832_v62, %v829_v9  ;;  %v819_v9 = vor.u32 %v818_v36, %v815_v35  ;;  %v956_v62 = vrot.slane %v954_v37, 4 }
  0x57   : > { %483 = vrot.lane.b32.xlu0 %v1656_v51, %s1789_s20  ;;  %v950_v51 = vshll.u32 %v1868_v13, 16  ;;  %v980_v35 = vshrl.u32 %v1952_v12, 16  ;;  %v983_v36 = vshll.u32 %v1952_v12, 16 }
  0x58   : > { %461 = vrot.lane.b32.xlu1 %v446_v53, %s1790_s21  ;;  %v806_v53 = vrot.slane %v805_v57, 4  ;;  %v948_v57 = vrot.slane %v947_v54, 4  ;;  %v797_v43 = vsel %vm2104_vm3, %v792_v8, %v796_v63  ;;  %v838_v54 = vrot.slane %v836_v34, 5 }
  0x59   : > { %v952_v22 = vrot.slane %v950_v51, 5  ;;  %v822_v51 = vshll.u32 %v1890_v30, 16  ;;  %v940_v63 = vsel %vm2104_vm3, %v935_v44, %v2108_v21  ;;  %v864_v8 = vshll.u32 %v2005_v52, 16 }
  0x5a   : > { %v820_v21 = vrot.slane %v819_v9, 4  ;;  %v846_v52 = vrot.slane %v844_v4, 5 }
  0x5b   : > { %507 = vrot.lane.b32.xlu0 %v2001_v46, %s1791_s5  ;;  %v1657_v46 = vcombine.low %v2017_v56, %v2017_v56  ;;  %v953_v50 = vsel %vm2104_vm3, %v948_v57, %v952_v22  ;;  %v824_v22 = vrot.slane %v822_v51, 5  ;;  %v963_v57 = vshll.u32 %v1884_v27, 16 }
  0x5c   : > { %487 = vrot.lane.b32.xlu1 %v1658_v20, %s1789_s20  ;;  %v972_v20 = vrot.slane %v970_v14, 5  ;;  %v857_v14 = vrot.slane %v855_v23, 4  ;;  %v866_v34 = vrot.slane %v864_v8, 5  ;;  %v888_v27 = vrot.slane %v886_v28, 5 }
  0x5d   : > { %v1009_v28 = vshll.u32 %v2017_v56, 16 }
  0x5e   : > { %v973_v42 = vor.u32 %v972_v20, %v969_v6  ;;  %v861_v16 = vor.u32 %v860_v61, %v857_v14  ;;  %v1020_v14 = vshrl.u32 %v2053_v33, 16  ;;  %v825_v61 = vsel %vm2104_vm3, %v820_v21, %v824_v22 }
  0x5f   : > { %509 = vrot.lane.b32.xlu0 %v2014_v55, %s1791_s5  ;;  %v811_v55 = vsel %vm2104_vm3, %v806_v53, %v810_v48  ;;  %v996_v48 = vshll.u32 %v1973_v24, 16  ;;  %v834_v53 = vrot.slane %v833_v31, 4  ;;  %v843_v31 = vrot.slane %v841_v41, 4 }
  0x60   : > { %513 = vrot.lane.b32.xlu1 %v498_v47, %s1791_s5  ;;  %v993_v47 = vshrl.u32 %v1973_v24, 16  ;;  %v974_v30 = vrot.slane %v973_v42, 4  ;;  %v1002_v42 = vshll.u32 %v1976_v25, 16  ;;  %v869_v25 = vshrl.u32 %v2027_v60, 16 }
  0x61   : > { %v998_v20 = vrot.slane %v996_v48, 5  ;;  %v839_v23 = vsel %vm2104_vm3, %v834_v53, %v838_v54  ;;  %v965_v48 = vrot.slane %v963_v57, 5  ;;  %v847_v51 = vor.u32 %v846_v52, %v843_v31 }
  0x62   : > { %v995_v6 = vrot.slane %v993_v47, 4  ;;  %v979_v37 = vsel %vm2104_vm3, %v974_v30, %v978_v3  ;;  %v982_v53 = vrot.slane %v980_v35, 4  ;;  %v985_v54 = vrot.slane %v983_v36, 5 }
  0x63   : > { %485 = vrot.lane.b32.xlu0 %v1657_v46, %s1789_s20  ;;  %v959_v46 = vrot.slane %v957_v11, 5  ;;  %v862_v11 = vrot.slane %v861_v16, 4  ;;  %v892_v41 = vshll.u32 %v2038_v7, 16  ;;  %v848_v16 = vrot.slane %v847_v51, 4 }
  0x64   : > { %898 = vrot.lane.b32.xlu1 %v811_v55, %s1792_s6  ;;  %v999_v44 = vor.u32 %v998_v20, %v995_v6  ;;  %v986_v6 = vor.u32 %v985_v54, %v982_v53  ;;  %v989_v20 = vshll.u32 %v1955_v15, 16  ;;  %v871_v22 = vrot.slane %v869_v25, 4 }
  0x65   : > { %v960_v55 = vor.u32 %v959_v46, %v956_v62  ;;  %v867_v9 = vsel %vm2104_vm3, %v862_v11, %v866_v34  ;;  %v1004_v62 = vrot.slane %v1002_v42, 5  ;;  %v872_v46 = vshll.u32 %v2027_v60, 16 }
  0x66   : > { %v1000_v3 = vrot.slane %v999_v44, 4  ;;  %v1006_v7 = vshrl.u32 %v2017_v56, 16  ;;  %v1029_v31 = vshll.u32 %v2059_v32, 16  ;;  %v991_v52 = vrot.slane %v989_v20, 5 }
  0x67   : > { %511 = vrot.lane.b32.xlu0 %v2062_v39, %s1791_s5  ;;  %v883_v39 = vshrl.u32 %v2043_v18, 16  ;;  %v961_v47 = vrot.slane %v960_v55, 4  ;;  %v878_v34 = vshll.u32 %v2023_v59, 16  ;;  %v987_v35 = vrot.slane %v986_v6, 4 }
  0x68   : > { %1035 = vrot.lane.b32.xlu1 %v953_v50, %s1792_s6  ;;  %v850_v50 = vshll.u32 %v1958_v17, 16  ;;  %v1022_v17 = vrot.slane %v1020_v14, 4  ;;  %v1005_v21 = vsel %vm2104_vm3, %v1000_v3, %v1004_v62  ;;  %v1011_v11 = vrot.slane %v1009_v28, 5 }
  0x69   : > { %v885_v45 = vrot.slane %v883_v39, 4  ;;  %v894_v39 = vrot.slane %v892_v41, 5  ;;  %v880_v32 = vrot.slane %v878_v34, 5 }
  0x6a   : > { %v852_v30 = vrot.slane %v850_v50, 5 }
  0x6b   : > { %896 = vrot.lane.b32.xlu0 %v797_v43, %s1792_s6  ;;  %v1023_v43 = vshll.u32 %v2053_v33, 16  ;;  %v889_v4 = vor.u32 %v888_v27, %v885_v45  ;;  %v1031_v45 = vrot.slane %v1029_v31, 5  ;;  %v992_v27 = vsel %vm2104_vm3, %v987_v35, %v991_v52 }
  0x6c   : > { %902 = vrot.lane.b32.xlu1 %v839_v23, %s1792_s6  ;;  %v874_v23 = vrot.slane %v872_v46, 5  ;;  %v853_v15 = vsel %vm2104_vm3, %v848_v16, %v852_v30 }
  0x6d   : > { %v1025_v8 = vrot.slane %v1023_v43, 5  ;;  %v890_v55 = vrot.slane %v889_v4, 4  ;;  %v1015_v43 = vshll.u32 %v2020_v58, 16 }
  0x6e   : > { %v875_v36 = vor.u32 %v874_v23, %v871_v22 }
  0x6f   : > { %1033 = vrot.lane.b32.xlu0 %v940_v63, %s1792_s6  ;;  %v966_v63 = vsel %vm2104_vm3, %v961_v47, %v965_v48  ;;  %v1026_v57 = vor.u32 %v1025_v8, %v1022_v17  ;;  %v895_v44 = vsel %vm2104_vm3, %v890_v55, %v894_v39  ;;  %v1017_v50 = vrot.slane %v1015_v43, 5 }
  0x70   : > { %1039 = vrot.lane.b32.xlu1 %v979_v37, %s1792_s6  ;;  %v1008_v37 = vrot.slane %v1006_v7, 4  ;;  %v876_v14 = vrot.slane %v875_v36, 4 }
  0x71   : > { %v1027_v42 = vrot.slane %v1026_v57, 4 }
  0x72   : > { %v1012_v59 = vor.u32 %v1011_v11, %v1008_v37  ;;  %v881_v47 = vsel %vm2104_vm3, %v876_v14, %v880_v32 }
  0x73   : > { %900 = vrot.lane.b32.xlu0 %v825_v61, %s1792_s6  ;;  %v1032_v61 = vsel %vm2104_vm3, %v1027_v42, %v1031_v45 }
  0x74   : > { %906 = vrot.lane.b32.xlu1 %v867_v9, %s1792_s6  ;;  %v1013_v48 = vrot.slane %v1012_v59, 4 }
  0x76   : > { %v1018_v51 = vsel %vm2104_vm3, %v1013_v48, %v1017_v50  ;;  %vm2355_vm3 = vmand %vm1195_vm14, %vm1503_vm15  ;;  %vm1516_vm15 = vcmask 1044484  }
  0x77   : > { %1037 = vrot.lane.b32.xlu0 %v966_v63, %s1792_s6 }
  0x78   : > { %1043 = vrot.lane.b32.xlu1 %v1005_v21, %s1792_s6 }
  0x7b   : > { %904 = vrot.lane.b32.xlu0 %v853_v15, %s1792_s6 }
  0x7c   : > { %910 = vrot.lane.b32.xlu1 %v895_v44, %s1792_s6 }
  0x7f   : > { %1041 = vrot.lane.b32.xlu0 %v992_v27, %s1792_s6 }
  0x80   : > { %1047 = vrot.lane.b32.xlu1 %v1032_v61, %s1792_s6 }
  0x83   : > { %908 = vrot.lane.b32.xlu0 %v881_v47, %s1792_s6 }
  0x86   : > { %v352_v53 = vpop.permute.xlu1 %351 }
  0x87   : > { %1045 = vrot.lane.b32.xlu0 %v1018_v51, %s1792_s6 }
  0x8a   : > { %v354_v58 = vpop.permute.xlu1 %353 }
  0x8d   : > { %v312_v54 = vpop.permute.xlu0 %311 }
  0x8e   : > { %v474_v25 = vpop.permute.xlu1 %473  ;;  %v525_v3 = vsel %vm523_vm4, %v1842_v2, %v312_v54 }
  0x8f   : > { %v542_v13 = vsel %vm540_vm5, %v525_v3, %v352_v53 }
  0x90   : > { %v558_v30 = vsel %vm557_vm6, %v542_v13, %v352_v53 }
  0x91   : > { %v314_v9 = vpop.permute.xlu0 %313 }
  0x92   : > { %v356_v62 = vpop.permute.xlu1 %355  ;;  %v527_v63 = vsel %vm523_vm4, %v1848_v5, %v314_v9 }
  0x93   : > { %v544_v20 = vsel %vm540_vm5, %v527_v63, %v354_v58 }
  0x94   : > { %v559_v39 = vsel %vm557_vm6, %v544_v20, %v354_v58 }
  0x95   : > { %v448_v46 = vpop.permute.xlu0 %447 }
  0x96   : > { %v316_v41 = vpop.permute.xlu1 %315  ;;  %v568_v6 = vsel %vm566_vm7, %v558_v30, %v448_v46 }
  0x97   : > { %v585_v2 = vsel %vm583_vm8, %v568_v6, %v474_v25  ;;  %v529_v44 = vsel %vm523_vm4, %v1860_v10, %v316_v41 }
  0x98   : > { %v601_v21 = vsel %vm600_vm9, %v585_v2, %v474_v25  ;;  %v546_v45 = vsel %vm540_vm5, %v529_v44, %v356_v62 }
  0x99   : > { %v450_v4 = vpop.permute.xlu0 %449  ;;  %v560_v59 = vsel %vm557_vm6, %v546_v45, %v356_v62 }
  0x9a   : > { %v358_v17 = vpop.permute.xlu1 %357  ;;  %v570_v7 = vsel %vm566_vm7, %v559_v39, %v450_v4 }
  0x9d   : > { %v318_v8 = vpop.permute.xlu0 %317 }
  0x9e   : > { %v452_v16 = vpop.permute.xlu1 %451  ;;  %v531_v27 = vsel %vm523_vm4, %v1881_v26, %v318_v8 }
  0x9f   : > { %v548_v43 = vsel %vm540_vm5, %v531_v27, %v358_v17  ;;  %v572_v61 = vsel %vm566_vm7, %v560_v59, %v452_v16 }
  0xa0   : > { %v561_v51 = vsel %vm557_vm6, %v548_v43, %v358_v17 }
  0xa1   : > { %v476_v22 = vpop.permute.xlu0 %475 }
  0xa2   : > { %v320_v23 = vpop.permute.xlu1 %319  ;;  %v587_v55 = vsel %vm583_vm8, %v570_v7, %v476_v22 }
  0xa3   : > { %v602_v52 = vsel %vm600_vm9, %v587_v55, %v476_v22  ;;  %v533_v63 = vsel %vm523_vm4, %v1903_v40, %v320_v23 }
  0xa5   : > { %v500_v28 = vpop.permute.xlu0 %499 }
  0xa6   : > { %v478_v57 = vpop.permute.xlu1 %477  ;;  %v611_v31 = vsel %vm609_vm10, %v601_v21, %v500_v28 }
  0xa7   : > { %v634_v15 = vunpack.c.l.bf16 %v611_v31  ;;  %v589_v48 = vsel %vm583_vm8, %v572_v61, %v478_v57 }
  0xa8   : > { %v603_v53 = vsel %vm600_vm9, %v589_v48, %v478_v57 }
  0xa9   : > { %1698 = vmatprep.mubr.msk.f32.mxu0 %vm647_vm11, %v634_v15  ;;  %v502_v34 = vpop.permute.xlu0 %501 }
  0xaa   : > { %v614_v35 = vsel %vm609_vm10, %v602_v52, %v502_v34  ;;  %v360_v36 = vpop.permute.xlu1 %359 }
  0xab   : > { %v635_v37 = vunpack.c.l.bf16 %v614_v35  ;;  %v550_v16 = vsel %vm540_vm5, %v533_v63, %v360_v36 }
  0xac   : > { %v562_v2 = vsel %vm557_vm6, %v550_v16, %v360_v36 }
  0xad   : > { %1699 = vmatmul.mubr.msk.f32.vlgmr.msra.gmra.mrb[0].mxu0 %vm647_vm11, %v635_v37  ;;  %v454_v11 = vpop.permute.xlu0 %453 }
  0xae   : > { %v362_v42 = vpop.permute.xlu1 %361  ;;  %v574_v58 = vsel %vm566_vm7, %v561_v51, %v454_v11 }
  0xb1   : > { %v322_v32 = vpop.permute.xlu0 %321 }
  0xb2   : > { %v456_v14 = vpop.permute.xlu1 %455  ;;  %v535_v20 = vsel %vm523_vm4, %v1952_v12, %v322_v32 }
  0xb3   : > { %v552_v39 = vsel %vm540_vm5, %v535_v20, %v362_v42  ;;  %v576_v7 = vsel %vm566_vm7, %v562_v2, %v456_v14 }
  0xb4   : > { %v563_v23 = vsel %vm557_vm6, %v552_v39, %v362_v42 }
  0xb5   : > { %v480_v47 = vpop.permute.xlu0 %479 }
  0xb6   : > { %v324_v50 = vpop.permute.xlu1 %323  ;;  %v591_v25 = vsel %vm583_vm8, %v574_v58, %v480_v47 }
  0xb7   : > { %v604_v41 = vsel %vm600_vm9, %v591_v25, %v480_v47  ;;  %v537_v34 = vsel %vm523_vm4, %v1973_v24, %v324_v50 }
  0xb9   : > { %v504_v54 = vpop.permute.xlu0 %503 }
  0xba   : > { %v617_v9 = vsel %vm609_vm10, %v603_v53, %v504_v54  ;;  %v482_v62 = vpop.permute.xlu1 %481 }
  0xbb   : > { %v636_v46 = vunpack.c.l.bf16 %v617_v9  ;;  %v593_v21 = vsel %vm583_vm8, %v576_v7, %v482_v62 }
  0xbc   : > { %v605_v57 = vsel %vm600_vm9, %v593_v21, %v482_v62 }
  0xbd   : > { %1701 = vmatprep.mubr.msk.f32.mxu0 %vm647_vm11, %v636_v46  ;;  %v506_v3 = vpop.permute.xlu0 %505 }
  0xbe   : > { %v620_v4 = vsel %vm609_vm10, %v604_v41, %v506_v3  ;;  %v364_v13 = vpop.permute.xlu1 %363 }
  0xbf   : > { %v637_v17 = vunpack.c.l.bf16 %v620_v4  ;;  %v554_v42 = vsel %vm540_vm5, %v537_v34, %v364_v13 }
  0xc0   : > { %v564_v61 = vsel %vm557_vm6, %v554_v42, %v364_v13 }
  0xc1   : > { %1702 = vmatmul.mubr.msk.f32.gmra.mrb[2].mxu0 %vm647_vm11, %v637_v17  ;;  %v458_v8 = vpop.permute.xlu0 %457 }
  0xc2   : > { %v366_v30 = vpop.permute.xlu1 %365  ;;  %v578_v31 = vsel %vm566_vm7, %v563_v23, %v458_v8 }
  0xc5   : > { %v326_v6 = vpop.permute.xlu0 %325 }
  0xc6   : > { %v460_v22 = vpop.permute.xlu1 %459  ;;  %v539_v15 = vsel %vm523_vm4, %v2017_v56, %v326_v6  ;;  %vm2360_vm4 = vmand %vm1505_vm0, %vm1506_vm2  ;;  %vm1517_vm0 = vsmask.f32 4352 }
  0xc7   : > { %v556_v44 = vsel %vm540_vm5, %v539_v15, %v366_v30  ;;  %v580_v48 = vsel %vm566_vm7, %v564_v61, %v460_v22  ;;  %vm1518_vm2 = vmand %vm1516_vm15, %vm1517_vm0  ;;  %vm1529_vm15 = vsmask.f32 7424 }
  0xc8   : > { %v565_v59 = vsel %vm557_vm6, %v556_v44, %v366_v30  ;;  %vm1509_vm6 = vcmask 1042434  }
  0xc9   : > { %v484_v28 = vpop.permute.xlu0 %483 }
  0xca   : > { %v462_v55 = vpop.permute.xlu1 %461  ;;  %v595_v35 = vsel %vm583_vm8, %v578_v31, %v484_v28 }
  0xcb   : > { %v606_v45 = vsel %vm600_vm9, %v595_v35, %v484_v28  ;;  %v582_v47 = vsel %vm566_vm7, %v565_v59, %v462_v55  ;;  %vm1510_vm7 = vsmask.f32 2304 }
  0xcd   : > { %v508_v52 = vpop.permute.xlu0 %507 }
  0xce   : > { %v488_v36 = vpop.permute.xlu1 %487  ;;  %v623_v37 = vsel %vm609_vm10, %v605_v57, %v508_v52 }
  0xcf   : > { %v638_v11 = vunpack.c.l.bf16 %v623_v37  ;;  %v599_v50 = vsel %vm583_vm8, %v582_v47, %v488_v36 }
  0xd0   : > { %v608_v54 = vsel %vm600_vm9, %v599_v50, %v488_v36 }
  0xd1   : > { %1704 = vmatprep.mubr.msk.f32.mxu1 %vm647_vm11, %v638_v11  ;;  %v510_v32 = vpop.permute.xlu0 %509 }
  0xd2   : > { %v626_v27 = vsel %vm609_vm10, %v606_v45, %v510_v32  ;;  %v514_v14 = vpop.permute.xlu1 %513 }
  0xd3   : > { %v639_v43 = vunpack.c.l.bf16 %v626_v27  ;;  %v632_v25 = vsel %vm609_vm10, %v608_v54, %v514_v14 }
  0xd4   : > { %v641_v17 = vunpack.c.l.bf16 %v632_v25 }
  0xd5   : > { %1705 = vmatmul.mubr.msk.f32.vlgmr.msra.gmra.mrb[0].mxu1 %vm647_vm11, %v639_v43  ;;  %v486_v51 = vpop.permute.xlu0 %485 }
  0xd6   : > { %v597_v53 = vsel %vm583_vm8, %v580_v48, %v486_v51  ;;  %v899_v58 = vpop.permute.xlu1 %898  ;;  %vm1508_vm8 = vmor %vm2360_vm4, %vm2355_vm3  ;;  %vm1520_vm3 = vcmask 1045509   ;;  %vm1521_vm4 = vsmask.f32 5376 }
  0xd7   : > { %v607_v9 = vsel %vm600_vm9, %v597_v53, %v486_v51  ;;  %v921_v46 = vmax.bf16 %v899_v58, %v1839_v1  ;;  %vm1511_vm9 = vmand %vm1509_vm6, %vm1510_vm7 }
  0xd8   : > { %vm2402_vm7 = vmand %vm1520_vm3, %vm1521_vm4 }
  0xd9   : > { %v512_v62 = vpop.permute.xlu0 %511 }
  0xda   : > { %v629_v41 = vsel %vm609_vm10, %v607_v9, %v512_v62  ;;  %v1036_v3 = vpop.permute.xlu1 %1035  ;;  %vm1513_vm10 = vcmask 1043459  }
  0xdb   : > { %v640_v4 = vunpack.c.l.bf16 %v629_v41  ;;  %v1058_v13 = vmax.bf16 %v1036_v3, %v1860_v10 }
  0xdd   : > { %1707 = vmatprep.mubr.msk.f32.mxu1 %vm647_vm11, %v640_v4  ;;  %v897_v8 = vpop.permute.xlu0 %896  ;;  %v1066_v63 = vmax.bf16 %v1058_v13, %v921_v46 }
  0xde   : > { %1708 = vmatmul.mubr.msk.f32.gmra.mrb[2].mxu1 %vm647_vm11, %v641_v17  ;;  %v903_v30 = vpop.permute.xlu1 %902  ;;  %v920_v16 = vmax.bf16 %v897_v8, %v1836_v0  ;;  %vm1419_vm11 = vcmask 523264  }
  0xdf   : > { %v1074_v6 = vunpack.c.l.bf16 %v1066_v63  ;;  %v923_v1 = vmax.bf16 %v903_v30, %v1916_v49 }
  0xe1   : > { %v1034_v20 = vpop.permute.xlu0 %1033  ;;  %v1159_v7 = vmul.f32 %v1074_v6, %v1074_v6  ;;  %v1104_v23 = vsel %vm1102_vm12, %v1074_v6, 0.0 }
  0xe2   : > { %v1057_v22 = vmax.bf16 %v1034_v20, %v1848_v5  ;;  %v1040_v2 = vpop.permute.xlu1 %1039 }
  0xe3   : > { %v1060_v10 = vmax.bf16 %v1040_v2, %v1903_v40  ;;  %v1167_v49 = vsel %vm1102_vm12, %v1159_v7, 0.0 }
  0xe4   : > { %v1065_v39 = vmax.bf16 %v1057_v22, %v920_v16 }
  0xe5   : > { %v901_v28 = vpop.permute.xlu0 %900  ;;  %v1068_v21 = vmax.bf16 %v1060_v10, %v923_v1 }
  0xe6   : > { %v1073_v55 = vunpack.c.l.bf16 %v1065_v39  ;;  %v907_v57 = vpop.permute.xlu1 %906  ;;  %v1669_v31 = vcombine.low %v1065_v39, %v1066_v63  ;;  %v922_v5 = vmax.bf16 %v901_v28, %v1887_v29 }
  0xe7   : > { %v1076_v34 = vunpack.c.l.bf16 %v1068_v21  ;;  %v925_v37 = vmax.bf16 %v907_v57, %v1990_v38 }
  0xe8   : > { %v1103_v0 = vsel %vm1102_vm12, %v1073_v55, 0.0  ;;  %v1158_v15 = vmul.f32 %v1073_v55, %v1073_v55  ;;  %1252 = vrot.lane.b32.xlu0 %v1669_v31, %s1793_s7 }
  0xe9   : > { %v1105_v40 = vadd.f32 %v1104_v23, %v1103_v0  ;;  %v1038_v52 = vpop.permute.xlu0 %1037  ;;  %v1161_v32 = vmul.f32 %v1076_v34, %v1076_v34  ;;  %v1108_v48 = vsel %vm1102_vm12, %v1076_v34, 0.0 }
  0xea   : > { %v1166_v35 = vsel %vm1102_vm12, %v1158_v15, 0.0  ;;  %v1059_v36 = vmax.bf16 %v1038_v52, %v1881_v26  ;;  %v1044_v11 = vpop.permute.xlu1 %1043 }
  0xeb   : > { %v1168_v44 = vadd.f32 %v1167_v49, %v1166_v35  ;;  %v1062_v42 = vmax.bf16 %v1044_v11, %v1973_v24  ;;  %v1171_v50 = vsel %vm1102_vm12, %v1161_v32, 0.0 }
  0xec   : > { %v1067_v45 = vmax.bf16 %v1059_v36, %v922_v5 }
  0xed   : > { %v905_v27 = vpop.permute.xlu0 %904  ;;  %v1070_v14 = vmax.bf16 %v1062_v42, %v925_v37 }
  0xee   : > { %v1075_v29 = vunpack.c.l.bf16 %v1067_v45  ;;  %v911_v59 = vpop.permute.xlu1 %910  ;;  %v1670_v43 = vcombine.low %v1067_v45, %v1068_v21  ;;  %v924_v26 = vmax.bf16 %v905_v27, %v1962_v19 }
  0xef   : > { %v1078_v58 = vunpack.c.l.bf16 %v1070_v14  ;;  %v927_v54 = vmax.bf16 %v911_v59, %v2043_v18 }
  0xf0   : > { %v1106_v61 = vsel %vm1102_vm12, %v1075_v29, 0.0  ;;  %v1160_v47 = vmul.f32 %v1075_v29, %v1075_v29  ;;  %1254 = vrot.lane.b32.xlu1 %v1670_v43, %s1793_s7 }
  0xf1   : > { %v1107_v38 = vadd.f32 %v1106_v61, %v1105_v40  ;;  %v1042_v24 = vpop.permute.xlu0 %1041  ;;  %v1163_v13 = vmul.f32 %v1078_v58, %v1078_v58 }
  0xf2   : > { %v1169_v51 = vsel %vm1102_vm12, %v1160_v47, 0.0  ;;  %v1061_v53 = vmax.bf16 %v1042_v24, %v1952_v12  ;;  %v1048_v25 = vpop.permute.xlu1 %1047  ;;  %v1112_v12 = vsel %vm1102_vm12, %v1078_v58, 0.0 }
  0xf3   : > { %v1170_v9 = vadd.f32 %v1169_v51, %v1168_v44  ;;  %v1109_v62 = vadd.f32 %v1108_v48, %v1107_v38  ;;  %v1064_v46 = vmax.bf16 %v1048_v25, %v2053_v33  ;;  %v1175_v20 = vsel %vm1102_vm12, %v1163_v13, 0.0 }
  0xf4   : > { %v1069_v41 = vmax.bf16 %v1061_v53, %v924_v26 }
  0xf5   : > { %v1172_v19 = vadd.f32 %v1171_v50, %v1170_v9  ;;  %v909_v3 = vpop.permute.xlu0 %908  ;;  %v1072_v17 = vmax.bf16 %v1064_v46, %v927_v54 }
  0xf6   : > { %v1077_v4 = vunpack.c.l.bf16 %v1069_v41  ;;  %v1671_v8 = vcombine.low %v1069_v41, %v1070_v14  ;;  %v926_v16 = vmax.bf16 %v909_v3, %v2027_v60 }
  0xf7   : > { %v1080_v22 = vunpack.c.l.bf16 %v1072_v17 }
  0xf8   : > { %v1110_v63 = vsel %vm1102_vm12, %v1077_v4, 0.0  ;;  %v1162_v30 = vmul.f32 %v1077_v4, %v1077_v4  ;;  %1256 = vrot.lane.b32.xlu0 %v1671_v8, %s1793_s7 }
  0xf9   : > { %v1111_v18 = vadd.f32 %v1110_v63, %v1109_v62  ;;  %v1046_v6 = vpop.permute.xlu0 %1045  ;;  %v1165_v21 = vmul.f32 %v1080_v22, %v1080_v22  ;;  %v1116_v57 = vsel %vm1102_vm12, %v1080_v22, 0.0 }
  0xfa   : > { %v1173_v33 = vsel %vm1102_vm12, %v1162_v30, 0.0  ;;  %v1063_v1 = vmax.bf16 %v1046_v6, %v2017_v56 }
  0xfb   : > { %v1174_v2 = vadd.f32 %v1173_v33, %v1172_v19  ;;  %v1113_v10 = vadd.f32 %v1112_v12, %v1111_v18  ;;  %v1179_v56 = vsel %vm1102_vm12, %v1165_v21, 0.0 }
  0xfc   : > { %v1071_v39 = vmax.bf16 %v1063_v1, %v926_v16 }
  0xfd   : > { %v1176_v7 = vadd.f32 %v1175_v20, %v1174_v2 }
  0xfe   : > { %v1079_v28 = vunpack.c.l.bf16 %v1071_v39  ;;  %v1672_v55 = vcombine.low %v1071_v39, %v1072_v17  ;;  %v1794_v39 = vmov 1983009808  }
 0x100   : > { %v1114_v60 = vsel %vm1102_vm12, %v1079_v28, 0.0  ;;  %v1164_v23 = vmul.f32 %v1079_v28, %v1079_v28  ;;  %1258 = vrot.lane.b32.xlu1 %v1672_v55, %s1793_s7  ;;  %v1301_v28 = vlaneseq  ;;  %v1795_v55 = vmov 1934713408  }
 0x101   : > { %v1115_v31 = vadd.f32 %v1114_v60, %v1113_v10  ;;  %v1314_v60 = vunpack.c.l.s4 %v1795_v55 }
 0x102   : > { %v1177_v0 = vsel %vm1102_vm12, %v1164_v23, 0.0  ;;  %vm2373_vm12 = vmor %vm1511_vm9, %vm1508_vm8  ;;  %vm1524_vm8 = vcmask 1046534   ;;  %vm1525_vm9 = vsmask.f32 6400 }
 0x103   : > { %v1178_v15 = vadd.f32 %v1177_v0, %v1176_v7  ;;  %v2300_v49 = vadd.f32 %v1116_v57, %v1115_v31  ;;  %v1299_v7 = vunpack.c.l.s4 %v1794_v39  ;;  %v2324_v31 = vshrl.u32 %v1301_v28, 7 }
 0x105   : > { %v2302_v5 = vadd.f32 %v1179_v56, %v1178_v15  ;;  %v1300_v57 = vunpack.c.0.s8 %v1299_v7  ;;  %v1315_v15 = vunpack.c.0.s8 %v1314_v60 }
 0x15a   : > { %v1253_v40 = vpop.permute.xlu0 %1252 }
 0x15b   : > { %1264 = vxpose.xlu0.c.b16.start [1/4] (short) (narrow) %v1253_v40, 16 }
 0x162   : > { %v1255_v52 = vpop.permute.xlu1 %1254 }
 0x163   : > { %1265 = vxpose.xlu0.c.b16.cont [2/4] (short) (narrow) %v1255_v52, 16  ;;  %v1796_v52 = vmov 0  }
 0x16a   : > { %v1257_v34 = vpop.permute.xlu0 %1256 }
 0x16b   : > { %1266 = vxpose.xlu0.c.b16.cont [3/4] (short) (narrow) %v1257_v34, 16  ;;  %v1293_v34 = vpack.i.b16 %v1796_v52, %v1796_v52 }
 0x172   : > { %v1259_v35 = vpop.permute.xlu1 %1258 }
 0x173   : > { %1267 = vxpose.xlu0.c.b16.end [4/4] (short) (narrow) %v1259_v35, 16  ;;  %v1303_v35 = vsub.s32 %v1300_v57, %v2324_v31 }
 0x180   : > { %v1700_v36 = vpop.f32.mrb[0].mxu0 }
 0x181   : > { %v1082_v37 = vsel %vm540_vm5, %v1700_v36, 0.0  ;;  %v1130_v11 = vmul.f32 %v1700_v36, %v1700_v36  ;;  %v742_v44 = vpop.f32.mrb[1].mxu0 }
 0x182   : > { %v1081_v42 = vsel %vm540_vm5, %v742_v44, 0.0  ;;  %v1129_v45 = vmul.f32 %v742_v44, %v742_v44  ;;  %1199 = vxpose.xlu1.b32.start [1/8] (short) (narrow) %v742_v44, 16 }
 0x183   : > { %v1138_v32 = vsel %vm540_vm5, %v1130_v11, 0.0  ;;  %v1083_v27 = vadd.f32 %v1082_v37, %v1081_v42  ;;  %v1318_v37 = vsub.s32 %v1315_v15, %v2324_v31 }
 0x184   : > { %v1137_v29 = vsel %vm540_vm5, %v1129_v45, 0.0 }
 0x185   : > { %v1139_v14 = vadd.f32 %v1138_v32, %v1137_v29 }
 0x186   : > { %1200 = vxpose.xlu1.b32.cont [2/8] (short) (narrow) %v1700_v36, 16 }
 0x194   : > { %v1703_v59 = vpop.f32.mrb[2].mxu0 }
 0x195   : > { %v752_v43 = vpop.f32.mrb[3].mxu0  ;;  %v1132_v61 = vmul.f32 %v1703_v59, %v1703_v59  ;;  %v1086_v38 = vsel %vm540_vm5, %v1703_v59, 0.0 }
 0x196   : > { %v1084_v47 = vsel %vm540_vm5, %v752_v43, 0.0  ;;  %v1131_v48 = vmul.f32 %v752_v43, %v752_v43  ;;  %1201 = vxpose.xlu1.b32.cont [3/8] (short) (narrow) %v752_v43, 16 }
 0x197   : > { %v1085_v26 = vadd.f32 %v1084_v47, %v1083_v27  ;;  %v1142_v53 = vsel %vm540_vm5, %v1132_v61, 0.0 }
 0x198   : > { %v1140_v50 = vsel %vm540_vm5, %v1131_v48, 0.0 }
 0x199   : > { %v1087_v24 = vadd.f32 %v1086_v38, %v1085_v26  ;;  %v1141_v51 = vadd.f32 %v1140_v50, %v1139_v14 }
 0x19a   : > { %1202 = vxpose.xlu1.b32.cont [4/8] (short) (narrow) %v1703_v59, 16 }
 0x19b   : > { %v1143_v58 = vadd.f32 %v1142_v53, %v1141_v51 }
 0x1a8   : > { %v1706_v54 = vpop.f32.mrb[0].mxu1 }
 0x1a9   : > { %v762_v25 = vpop.f32.mrb[1].mxu1  ;;  %v1134_v9 = vmul.f32 %v1706_v54, %v1706_v54  ;;  %v1090_v19 = vsel %vm540_vm5, %v1706_v54, 0.0 }
 0x1aa   : > { %v1088_v62 = vsel %vm540_vm5, %v762_v25, 0.0  ;;  %v1133_v46 = vmul.f32 %v762_v25, %v762_v25  ;;  %1203 = vxpose.xlu1.b32.cont [5/8] (short) (narrow) %v762_v25, 16  ;;  %v1181_v25 = vrot.slane %v2302_v5, 4 }
 0x1ab   : > { %v1089_v41 = vadd.f32 %v1088_v62, %v1087_v24  ;;  %v1146_v17 = vsel %vm540_vm5, %v1134_v9, 0.0  ;;  %v1118_v9 = vrot.slane %v2300_v49, 4 }
 0x1ac   : > { %v1144_v3 = vsel %vm540_vm5, %v1133_v46, 0.0  ;;  %v1182_v46 = vadd.f32 %v1181_v25, %v2302_v5 }
 0x1ad   : > { %v1145_v4 = vadd.f32 %v1144_v3, %v1143_v58  ;;  %v1091_v13 = vadd.f32 %v1090_v19, %v1089_v41  ;;  %v1119_v3 = vadd.f32 %v1118_v9, %v2300_v49 }
 0x1ae   : > { %1204 = vxpose.xlu1.b32.cont [6/8] (short) (narrow) %v1706_v54, 16  ;;  %v1183_v19 = vrot.slane %v1182_v46, 2 }
 0x1af   : > { %v1147_v8 = vadd.f32 %v1146_v17, %v1145_v4  ;;  %v1120_v17 = vrot.slane %v1119_v3, 2 }
 0x1b1   : > { %v1709_v63 = vpop.f32.mrb[2].mxu1 }
 0x1b2   : > { %v772_v30 = vpop.f32.mrb[3].mxu1  ;;  %v1136_v12 = vmul.f32 %v1709_v63, %v1709_v63  ;;  %v1094_v33 = vsel %vm540_vm5, %v1709_v63, 0.0 }
 0x1b3   : > { %v1092_v16 = vsel %vm540_vm5, %v772_v30, 0.0  ;;  %v1135_v18 = vmul.f32 %v772_v30, %v772_v30  ;;  %1205 = vxpose.xlu1.b32.cont [7/8] (short) (narrow) %v772_v30, 16  ;;  %v1121_v30 = vadd.f32 %v1120_v17, %v1119_v3 }
 0x1b4   : > { %v1093_v6 = vadd.f32 %v1092_v16, %v1091_v13  ;;  %v1150_v2 = vsel %vm540_vm5, %v1136_v12, 0.0  ;;  %v1184_v13 = vadd.f32 %v1183_v19, %v1182_v46 }
 0x1b5   : > { %v1148_v20 = vsel %vm540_vm5, %v1135_v18, 0.0  ;;  %v1122_v16 = vrot.slane %v1121_v30, 1 }
 0x1b6   : > { %v2319_v1 = vadd.f32 %v1094_v33, %v1093_v6  ;;  %v1149_v22 = vadd.f32 %v1148_v20, %v1147_v8 }
 0x1b7   : > { %1206 = vxpose.xlu1.b32.end [8/8] (short) (narrow) %v1709_v63, 16  ;;  %v1185_v63 = vrot.slane %v1184_v13, 1  ;;  %v1123_v5 = vadd.f32 %v1122_v16, %v1121_v30 }
 0x1b8   : > { %v2322_v10 = vadd.f32 %v1150_v2, %v1149_v22  ;;  %v1798_v22 = vmov 1966171168   ;;  %v1096_v7 = vrot.slane %v2319_v1, 4 }
 0x1b9   : > { %v1186_v12 = vadd.f32 %v1185_v63, %v1184_v13  ;;  %v1457_v2 = vunpack.c.l.s4 %v1798_v22  ;;  %v1532_v63 = vld [vmem:[%s175_s15] sm:$0xff] }
 0x1ba   : > { %v1152_v33 = vrot.slane %v2322_v10, 4 }
 0x1bb   : > { %v1458_v55 = vunpack.c.0.s8 %v1457_v2 }
 0x1bc   : > { %v1153_v28 = vadd.f32 %v1152_v33, %v2322_v10 }
 0x1cd   : > { %v1272_v23 = vpop.trf.xlu0 }
 0x1ce   : > { %v1281_v0 = vrot.slane %v1272_v23, 2 }
 0x21b   : > { %v1215_v21 = vpop.trf.xlu1 }
 0x21f   : > { %v1216_v56 = vpop.trf.xlu1 }
 0x220   : > { %v1231_v40 = vpack.c.bf16 %v1216_v56, %v1215_v21  ;;  %v1154_v56 = vrot.slane %v1153_v28, 2 }
 0x222   : > { %v1285_v36 = vsel %vm1282_vm13, %v1231_v40, %v1281_v0  ;;  %v1097_v0 = vadd.f32 %v1096_v7, %v2319_v1  ;;  %vm2379_vm13 = vmand %vm1513_vm10, %vm781_vm1 }
 0x223   : > { %v1287_v11 = vpack.i.b16 %v1796_v52, %v1285_v36  ;;  %v1289_v44 = vshrl.u32 %v1285_v36, 16  ;;  %vm1515_vm1 = vmor %vm2379_vm13, %vm2373_vm12  ;;  %vm1528_vm13 = vcmask 1047559  }
 0x224   : > { %vm2398_vm6 = vmor %vm1518_vm2, %vm1515_vm1  ;;  %vm1197_vm1 = vcmask 123904  }
 0x225   : > { %v1297_v42 = vcombine.high %v1287_v11, %v1293_v34  ;;  %v1304_v45 = vrot.slane %v1287_v11, %v1303_v35  ;;  %v1291_v32 = vpack.i.b16 %v1796_v52, %v1289_v44  ;;  %v1098_v11 = vrot.slane %v1097_v0, 2  ;;  %vm1523_vm10 = vmor %vm2402_vm7, %vm2398_vm6 }
 0x226   : > { %vm1526_vm12 = vmand %vm1524_vm8, %vm1525_vm9 }
 0x227   : > { %v1311_v27 = vrot.slane %v1297_v42, %v1303_v35  ;;  %v1353_v29 = vrot.slane %v1291_v32, %v1303_v35  ;;  %v1346_v14 = vcombine.high %v1291_v32, %v1293_v34  ;;  %v2332_v59 = vrot.slane %v1304_v45, %v1318_v37  ;;  %vm2420_vm0 = vmor %vm1526_vm12, %vm1523_vm10 }
 0x228   : > { %v1312_v43 = vcombine.high %v1304_v45, %v1796_v52  ;;  %v1461_v34 = vsub.s32 %v1458_v55, %v2324_v31  ;;  %v1155_v42 = vadd.f32 %v1154_v56, %v1153_v28 }
 0x229   : > { %v1368_v61 = vrot.slane %v1353_v29, %v1318_v37  ;;  %v1360_v47 = vrot.slane %v1346_v14, %v1303_v35  ;;  %v1327_v48 = vcombine.high %v1311_v27, %v1796_v52  ;;  %v2338_v38 = vrot.slane %v1311_v27, %v1318_v37 }
 0x22a   : > { %v2336_v26 = vrot.slane %v1312_v43, %v1318_v37  ;;  %v1361_v58 = vcombine.high %v1353_v29, %v1796_v52  ;;  %v1342_v21 = vcombine.high %v2332_v59, %v1796_v52 }
 0x22b   : > { %1396 = vrot.lane.b32.xlu0 %v1368_v61, %s1797_s8  ;;  %v1376_v50 = vcombine.high %v1360_v47, %v1796_v52  ;;  %v2341_v24 = vrot.slane %v1327_v48, %v1318_v37  ;;  %v1391_v51 = vcombine.high %v1368_v61, %v1796_v52  ;;  %v1383_v62 = vrot.slane %v1360_v47, %v1318_v37 }
 0x22c   : > { %v1375_v54 = vrot.slane %v1361_v58, %v1318_v37  ;;  %v1343_v40 = vcombine.high %v2336_v26, %v1796_v52  ;;  %v1344_v45 = vcombine.high %v2338_v38, %v1796_v52  ;;  %v1156_v61 = vrot.slane %v1155_v42, 1 }
 0x22d   : > { %v1390_v53 = vrot.slane %v1376_v50, %v1318_v37  ;;  %v1393_v4 = vcombine.high %v1383_v62, %v1796_v52  ;;  %v1099_v47 = vadd.f32 %v1098_v11, %v1097_v0  ;;  %v1345_v50 = vcombine.high %v2341_v24, %v1796_v52 }
 0x22e   : > { %v1392_v41 = vcombine.high %v1375_v54, %v1796_v52 }
 0x22f   : > { %1399 = vrot.lane.b32.xlu0 %v1391_v51, %s1797_s8  ;;  %1414 = vrot.lane.b32.xlu1 %v1390_v53, %s1797_s8  ;;  %v1394_v8 = vcombine.high %v1390_v53, %v1796_v52  ;;  %v1100_v52 = vrot.slane %v1099_v47, 1 }
 0x231   : > { %v1101_v3 = vadd.f32 %v1100_v52, %v1099_v47 }
 0x233   : > { %1402 = vrot.lane.b32.xlu0 %v1375_v54, %s1797_s8 }
 0x237   : > { %1408 = vrot.lane.b32.xlu0 %v1383_v62, %s1797_s8 }
 0x23b   : > { %1405 = vrot.lane.b32.xlu0 %v1392_v41, %s1797_s8 }
 0x23f   : > { %1411 = vrot.lane.b32.xlu0 %v1393_v4, %s1797_s8 }
 0x243   : > { %1417 = vrot.lane.b32.xlu0 %v1394_v8, %s1797_s8 }
 0x247   : > { %1188 = vrot.lane.b32.xlu0 %v1186_v12, %s1788_s19 }
 0x24b   : > { %1125 = vrot.lane.b32.xlu0 %v1123_v5, %s1788_s19 }
 0x29d   : > { %v1397_v18 = vpop.permute.xlu0 %1396 }
 0x29e   : > { %v1422_v15 = vsel %vm1419_vm11, %v2332_v59, %v1397_v18 }
 0x2a1   : > { %v1400_v49 = vpop.permute.xlu0 %1399  ;;  %v1415_v59 = vpop.permute.xlu1 %1414 }
 0x2a2   : > { %v1425_v23 = vsel %vm1419_vm11, %v1342_v21, %v1400_v49  ;;  %v1440_v58 = vsel %vm1419_vm11, %v2341_v24, %v1415_v59 }
 0x2a3   : > { %v1452_v35 = vcombine.low %v1422_v15, %v1425_v23 }
 0x2a5   : > { %v1403_v39 = vpop.permute.xlu0 %1402  ;;  %v1462_v31 = vrot.slane %v1452_v35, %v1461_v34 }
 0x2a6   : > { %v1428_v1 = vsel %vm1419_vm11, %v2336_v26, %v1403_v39 }
 0x2a9   : > { %v1409_v60 = vpop.permute.xlu0 %1408 }
 0x2aa   : > { %v1434_v26 = vsel %vm1419_vm11, %v2338_v38, %v1409_v60  ;;  %v1157_v38 = vadd.f32 %v1156_v61, %v1155_v42 }
 0x2ad   : > { %v1406_v36 = vpop.permute.xlu0 %1405 }
 0x2ae   : > { %v1431_v37 = vsel %vm1419_vm11, %v1343_v40, %v1406_v36 }
 0x2af   : > { %v1453_v44 = vcombine.low %v1428_v1, %v1431_v37 }
 0x2b1   : > { %v1469_v32 = vrot.slane %v1453_v44, %v1461_v34  ;;  %v1412_v27 = vpop.permute.xlu0 %1411 }
 0x2b2   : > { %v1437_v29 = vsel %vm1419_vm11, %v1344_v45, %v1412_v27 }
 0x2b3   : > { %v1484_v43 = vcombine.low %v1462_v31, %v1469_v32  ;;  %v1454_v51 = vcombine.low %v1434_v26, %v1437_v29 }
 0x2b5   : > { %v1418_v53 = vpop.permute.xlu0 %1417  ;;  %v1476_v9 = vrot.slane %v1454_v51, %v1461_v34  ;;  %v1492_v4 = vrot.slane %v1484_v43, %v1461_v34 }
 0x2b6   : > { %v1443_v54 = vsel %vm1419_vm11, %v1345_v50, %v1418_v53  ;;  %vm1530_vm11 = vmand %vm1528_vm13, %vm1529_vm15 }
 0x2b7   : > { %v1455_v25 = vcombine.low %v1440_v58, %v1443_v54  ;;  %vm1531_vm2 = vmor %vm1530_vm11, %vm2420_vm0 }
 0x2b9   : > { %v1483_v62 = vrot.slane %v1455_v25, %v1461_v34  ;;  %v1189_v46 = vpop.permute.xlu0 %1188 }
 0x2ba   : > { %v1191_v41 = vsel %vm540_vm5, %v1157_v38, %v1189_v46 }
 0x2bb   : > { %v1485_v19 = vcombine.low %v1476_v9, %v1483_v62  ;;  %v1193_v17 = vrot.slane %v1191_v41, 7 }
 0x2bd   : > { %v1499_v13 = vrot.slane %v1485_v19, %v1461_v34  ;;  %v1126_v8 = vpop.permute.xlu0 %1125 }
 0x2be   : > { %v1128_v30 = vsel %vm540_vm5, %v1101_v3, %v1126_v8 }
 0x2bf   : > { %v1500_v12 = vcombine.low %v1492_v4, %v1499_v13  ;;  %v1196_v16 = vsel %vm1195_vm14, %v1128_v30, %v1193_v17 }
 0x2c0   : > { %1198 = vst.msk [vmem:[%s179_s18] sm:$0x3] %vm1197_vm1, %v1196_v16 }
 0x2c1   : > { %v1533_v5 = vsel %vm1531_vm2, %v1500_v12, %v1532_v63 }
 0x2c2   : > { %1534 = vst [vmem:[%s175_s15] sm:$0xff] %v1533_v5 }
 0x2c3 PF: > { %s14_s12 = sadd.s32 1, %s1785_s12  }
 0x2c4   : > { %p11_p4 = scmp.ge.s32.totalorder %s14_s12, 4  }
 0x2c6   :  { %13 = sbr.rel (!%p11_p4) target bundleno = 1 (0x1), region = 70 }

</bundles_post_ra>
